<compile_context>
chip_gen: v7x
topology: tpu7x:2x2x1
jax: 0.10.0
libtpu: 0.0.40
codegen_flags: <defaults>
</compile_context>

<pallas_src>
import math

import jax
import jax.numpy as jnp
from jax.experimental import pallas as pl
from jax.experimental.pallas import tpu as pltpu

LANE = 128


# ---------------------------------------------------------------------------
# Pallas kernel: fused 4-layer MLP  (3 hidden Linear+ReLU, 1 output Linear)
# All feature dims are 128-padded -> every matmul / store is lane-dense.
# ---------------------------------------------------------------------------
def _mlp_kernel(x_ref,
                w0_ref, b0_ref,
                w1_ref, b1_ref,
                w2_ref, b2_ref,
                wo_ref, bo_ref,
                o_ref):
    # hidden layer 0: Linear + ReLU   (bf16 MXU inputs, f32 accumulate)
    h = jnp.dot(x_ref[...], w0_ref[...], preferred_element_type=jnp.float32)
    h = jnp.maximum(h + b0_ref[...], 0.0)

    # hidden layer 1: Linear + ReLU
    h = jnp.dot(h.astype(jnp.bfloat16), w1_ref[...],
                preferred_element_type=jnp.float32)
    h = jnp.maximum(h + b1_ref[...], 0.0)

    # hidden layer 2: Linear + ReLU
    h = jnp.dot(h.astype(jnp.bfloat16), w2_ref[...],
                preferred_element_type=jnp.float32)
    h = jnp.maximum(h + b2_ref[...], 0.0)

    # output layer: Linear (with bias)
    out = jnp.dot(h.astype(jnp.bfloat16), wo_ref[...],
                  preferred_element_type=jnp.float32)
    o_ref[...] = (out + bo_ref[...]).astype(o_ref.dtype)


# ---------------------------------------------------------------------------
# Wrapper: flatten (View), pad to lane-dense shapes, batch-tiled pallas_call.
# ---------------------------------------------------------------------------
def _round_up(x, m):
    return (x + m - 1) // m * m


def _pad2(a, rows, cols):
    return jnp.pad(a, ((0, rows - a.shape[0]), (0, cols - a.shape[1])))


def feedforward_pallas(x_nchw, params):
    """Runs the Feedforward forward pass.

    Args:
      x_nchw: (B, C, H, W) float32 input (PyTorch NCHW convention).
      params: dict with w0,b0,w1,b1,w2,b2,wo,bo  (weights already (in, out)).

    Returns:
      (B, out_features) float32 output.
    """
    B = x_nchw.shape[0]
    d_in = math.prod(x_nchw.shape[1:])
    # "View" flatten layer — glue done in plain JAX (row-major, matches torch).
    x = x_nchw.reshape(B, d_in)

    out_features = params["wo"].shape[1]

    # Lane-dense padded widths.
    DP = _round_up(d_in, LANE)                              # padded input width
    HP = _round_up(max(params["w0"].shape[1],
                       params["w1"].shape[1],
                       params["w2"].shape[1]), LANE)        # padded hidden width
    OP = _round_up(out_features, LANE)                      # padded output width

    # Batch tile: large enough to pipeline at big B, VMEM-safe on v7x (64 MiB).
    TB = 512 if B >= 512 else _round_up(B, 128)
    B_pad = _round_up(B, TB)
    grid = (B_pad // TB,)

    # bf16 MXU operands; biases stay f32 (added to f32 accumulators).
    x_p = _pad2(x, B_pad, DP).astype(jnp.bfloat16)
    w0 = _pad2(params["w0"], DP, HP).astype(jnp.bfloat16)
    b0 = _pad2(params["b0"], 1, HP).astype(jnp.float32)
    w1 = _pad2(params["w1"], HP, HP).astype(jnp.bfloat16)
    b1 = _pad2(params["b1"], 1, HP).astype(jnp.float32)
    w2 = _pad2(params["w2"], HP, HP).astype(jnp.bfloat16)
    b2 = _pad2(params["b2"], 1, HP).astype(jnp.float32)
    wo = _pad2(params["wo"], HP, OP).astype(jnp.bfloat16)
    bo = _pad2(params["bo"], 1, OP).astype(jnp.float32)

    # x / output tiled along batch; weights & biases VMEM-resident (constant maps).
    in_specs = [
        pl.BlockSpec((TB, DP), lambda i: (i, 0)),   # x
        pl.BlockSpec((DP, HP), lambda i: (0, 0)),   # w0
        pl.BlockSpec((1, HP),  lambda i: (0, 0)),   # b0
        pl.BlockSpec((HP, HP), lambda i: (0, 0)),   # w1
        pl.BlockSpec((1, HP),  lambda i: (0, 0)),   # b1
        pl.BlockSpec((HP, HP), lambda i: (0, 0)),   # w2
        pl.BlockSpec((1, HP),  lambda i: (0, 0)),   # b2
        pl.BlockSpec((HP, OP), lambda i: (0, 0)),   # wo
        pl.BlockSpec((1, OP),  lambda i: (0, 0)),   # bo
    ]
    out_spec = pl.BlockSpec((TB, OP), lambda i: (i, 0))

    out_padded = pl.pallas_call(
        _mlp_kernel,
        out_shape=jax.ShapeDtypeStruct((B_pad, OP), jnp.float32),
        grid=grid,
        in_specs=in_specs,
        out_specs=out_spec,
        compiler_params=pltpu.CompilerParams(
            dimension_semantics=("parallel",),
            vmem_limit_bytes=32 * 1024 * 1024),
    )(x_p, w0, b0, w1, b1, w2, b2, wo, bo)

    # TODO(synk): for persistently tiny B, amortize weight DMA across calls
    # (cross-pallas_call VMEM residency / P10) instead of per-call re-DMA.
    return out_padded[:B, :out_features]


# ---------------------------------------------------------------------------
# Deterministic parameter construction (torch.nn.Linear-like init, synthetic)
# ---------------------------------------------------------------------------
def make_params(key, d_in, hidden, out_features):
    dims = [d_in] + list(hidden) + [out_features]
    names = ["0", "1", "2", "o"]
    params = {}
    for i, name in enumerate(names):
        fan_in, fan_out = dims[i], dims[i + 1]
        key, kw, kb = jax.random.split(key, 3)
        bound = 1.0 / math.sqrt(float(fan_in))
        # stored as (in, out) so the kernel does x @ W
        params[f"w{name}"] = jax.random.uniform(
            kw, (fan_in, fan_out), jnp.float32, -bound, bound)
        params[f"b{name}"] = jax.random.uniform(
            kb, (1, fan_out), jnp.float32, -bound, bound)
    return params


# ---------------------------------------------------------------------------
# References (pure JAX) for sanity checks
# ---------------------------------------------------------------------------
def feedforward_ref_bf16(x_nchw, params):
    """Same bf16-input / f32-accumulate recipe as the kernel."""
    B = x_nchw.shape[0]
    x = x_nchw.reshape(B, -1)

    def lin(a, w, b):
        return jnp.dot(a.astype(jnp.bfloat16), w.astype(jnp.bfloat16),
                       preferred_element_type=jnp.float32) + b

    h = jnp.maximum(lin(x, params["w0"], params["b0"]), 0.0)
    h = jnp.maximum(lin(h, params["w1"], params["b1"]), 0.0)
    h = jnp.maximum(lin(h, params["w2"], params["b2"]), 0.0)
    return lin(h, params["wo"], params["bo"])


def feedforward_ref_f32(x_nchw, params):
    B = x_nchw.shape[0]
    x = x_nchw.reshape(B, -1)
    h = jnp.maximum(x @ params["w0"] + params["b0"], 0.0)
    h = jnp.maximum(h @ params["w1"] + params["b1"], 0.0)
    h = jnp.maximum(h @ params["w2"] + params["b2"], 0.0)
    return h @ params["wo"] + params["bo"]


if __name__ == "__main__":
    key = jax.random.PRNGKey(0)
    kx, kp = jax.random.split(key)

    B, C, H, W = 2, 4, 16, 16          # NCHW, in_features = (4, 16, 16)
    hidden = (32, 32, 32)              # network_layout: num_layers=3, layer_size=32
    out_features = 8

    x = jax.random.normal(kx, (B, C, H, W), dtype=jnp.float32)
    params = make_params(kp, C * H * W, hidden, out_features)

    out = feedforward_pallas(x, params)
    out = jax.block_until_ready(out)
    assert out.shape == (B, out_features)

    # Tight check against a reference using the identical bf16/f32 recipe.
    ref_bf16 = feedforward_ref_bf16(x, params)
    assert jnp.allclose(out, ref_bf16, atol=1e-3, rtol=1e-3), \
        "mismatch vs bf16-matched reference"

    # Loose sanity check against the pure-f32 reference (bf16 quantization noise).
    ref_f32 = feedforward_ref_f32(x, params)
    assert jnp.allclose(out, ref_f32, atol=5e-2, rtol=5e-2), \
        "mismatch vs f32 reference"

    print("KERNEL_OK")
</pallas_src>

<mosaic_0001>
module attributes {stable_mosaic.version = 11 : i64} {
  func.func @_mlp_kernel(%arg0: i32, %arg1: memref<128x1024xbf16, #tpu.memory_space<vmem>>, %arg2: memref<1024x128xbf16, #tpu.memory_space<vmem>>, %arg3: memref<1x128xf32, #tpu.memory_space<vmem>>, %arg4: memref<128x128xbf16, #tpu.memory_space<vmem>>, %arg5: memref<1x128xf32, #tpu.memory_space<vmem>>, %arg6: memref<128x128xbf16, #tpu.memory_space<vmem>>, %arg7: memref<1x128xf32, #tpu.memory_space<vmem>>, %arg8: memref<128x128xbf16, #tpu.memory_space<vmem>>, %arg9: memref<1x128xf32, #tpu.memory_space<vmem>>, %arg10: memref<128x128xf32, #tpu.memory_space<vmem>>) attributes {dimension_semantics = [#tpu.dimension_semantics<parallel>], iteration_bounds = array<i64: 1>, scalar_prefetch = 0 : i64, scratch_operands = 0 : i64, tpu.core_type = #tpu.core_type<tc>, window_params = [{transform_indices = @transform_0, window_bounds = array<i64: 128, 1024>}, {pipeline_mode = #tpu.pipeline_mode<synchronous>, transform_indices = @transform_1, window_bounds = array<i64: 1024, 128>}, {pipeline_mode = #tpu.pipeline_mode<synchronous>, transform_indices = @transform_2, window_bounds = array<i64: 1, 128>}, {pipeline_mode = #tpu.pipeline_mode<synchronous>, transform_indices = @transform_3, window_bounds = array<i64: 128, 128>}, {pipeline_mode = #tpu.pipeline_mode<synchronous>, transform_indices = @transform_4, window_bounds = array<i64: 1, 128>}, {pipeline_mode = #tpu.pipeline_mode<synchronous>, transform_indices = @transform_5, window_bounds = array<i64: 128, 128>}, {pipeline_mode = #tpu.pipeline_mode<synchronous>, transform_indices = @transform_6, window_bounds = array<i64: 1, 128>}, {pipeline_mode = #tpu.pipeline_mode<synchronous>, transform_indices = @transform_7, window_bounds = array<i64: 128, 128>}, {pipeline_mode = #tpu.pipeline_mode<synchronous>, transform_indices = @transform_8, window_bounds = array<i64: 1, 128>}, {transform_indices = @transform_9, window_bounds = array<i64: 128, 128>}]} {
    %c0 = arith.constant 0 : index
    %c0_0 = arith.constant 0 : index
    %0 = vector.load %arg1[%c0, %c0_0] : memref<128x1024xbf16, #tpu.memory_space<vmem>>, vector<128x1024xbf16>
    %c0_1 = arith.constant 0 : index
    %c0_2 = arith.constant 0 : index
    %1 = vector.load %arg2[%c0_1, %c0_2] : memref<1024x128xbf16, #tpu.memory_space<vmem>>, vector<1024x128xbf16>
    %cst = arith.constant dense<0.000000e+00> : vector<128x128xf32>
    %2 = tpu.matmul %0, %1, %cst {dimension_numbers = #tpu.dot_dimension_numbers<[1], [0], [0], [1], [0, 0, 1, 1], [], []>} : vector<128x1024xbf16>, vector<1024x128xbf16>, vector<128x128xf32> -> vector<128x128xf32>
    %c0_3 = arith.constant 0 : index
    %c0_4 = arith.constant 0 : index
    %3 = vector.load %arg3[%c0_3, %c0_4] : memref<1x128xf32, #tpu.memory_space<vmem>>, vector<1x128xf32>
    %4 = vector.broadcast %3 : vector<1x128xf32> to vector<128x128xf32>
    %5 = arith.addf %2, %4 : vector<128x128xf32>
    %cst_5 = arith.constant 0.000000e+00 : f32
    %6 = vector.broadcast %cst_5 : f32 to vector<128x128xf32>
    %7 = arith.maximumf %5, %6 : vector<128x128xf32>
    %8 = arith.truncf %7 : vector<128x128xf32> to vector<128x128xbf16>
    %c0_6 = arith.constant 0 : index
    %c0_7 = arith.constant 0 : index
    %9 = vector.load %arg4[%c0_6, %c0_7] : memref<128x128xbf16, #tpu.memory_space<vmem>>, vector<128x128xbf16>
    %cst_8 = arith.constant dense<0.000000e+00> : vector<128x128xf32>
    %10 = tpu.matmul %8, %9, %cst_8 {dimension_numbers = #tpu.dot_dimension_numbers<[1], [0], [0], [1], [0, 0, 1, 1], [], []>} : vector<128x128xbf16>, vector<128x128xbf16>, vector<128x128xf32> -> vector<128x128xf32>
    %c0_9 = arith.constant 0 : index
    %c0_10 = arith.constant 0 : index
    %11 = vector.load %arg5[%c0_9, %c0_10] : memref<1x128xf32, #tpu.memory_space<vmem>>, vector<1x128xf32>
    %12 = vector.broadcast %11 : vector<1x128xf32> to vector<128x128xf32>
    %13 = arith.addf %10, %12 : vector<128x128xf32>
    %cst_11 = arith.constant 0.000000e+00 : f32
    %14 = vector.broadcast %cst_11 : f32 to vector<128x128xf32>
    %15 = arith.maximumf %13, %14 : vector<128x128xf32>
    %16 = arith.truncf %15 : vector<128x128xf32> to vector<128x128xbf16>
    %c0_12 = arith.constant 0 : index
    %c0_13 = arith.constant 0 : index
    %17 = vector.load %arg6[%c0_12, %c0_13] : memref<128x128xbf16, #tpu.memory_space<vmem>>, vector<128x128xbf16>
    %cst_14 = arith.constant dense<0.000000e+00> : vector<128x128xf32>
    %18 = tpu.matmul %16, %17, %cst_14 {dimension_numbers = #tpu.dot_dimension_numbers<[1], [0], [0], [1], [0, 0, 1, 1], [], []>} : vector<128x128xbf16>, vector<128x128xbf16>, vector<128x128xf32> -> vector<128x128xf32>
    %c0_15 = arith.constant 0 : index
    %c0_16 = arith.constant 0 : index
    %19 = vector.load %arg7[%c0_15, %c0_16] : memref<1x128xf32, #tpu.memory_space<vmem>>, vector<1x128xf32>
    %20 = vector.broadcast %19 : vector<1x128xf32> to vector<128x128xf32>
    %21 = arith.addf %18, %20 : vector<128x128xf32>
    %cst_17 = arith.constant 0.000000e+00 : f32
    %22 = vector.broadcast %cst_17 : f32 to vector<128x128xf32>
    %23 = arith.maximumf %21, %22 : vector<128x128xf32>
    %24 = arith.truncf %23 : vector<128x128xf32> to vector<128x128xbf16>
    %c0_18 = arith.constant 0 : index
    %c0_19 = arith.constant 0 : index
    %25 = vector.load %arg8[%c0_18, %c0_19] : memref<128x128xbf16, #tpu.memory_space<vmem>>, vector<128x128xbf16>
    %cst_20 = arith.constant dense<0.000000e+00> : vector<128x128xf32>
    %26 = tpu.matmul %24, %25, %cst_20 {dimension_numbers = #tpu.dot_dimension_numbers<[1], [0], [0], [1], [0, 0, 1, 1], [], []>} : vector<128x128xbf16>, vector<128x128xbf16>, vector<128x128xf32> -> vector<128x128xf32>
    %c0_21 = arith.constant 0 : index
    %c0_22 = arith.constant 0 : index
    %27 = vector.load %arg9[%c0_21, %c0_22] : memref<1x128xf32, #tpu.memory_space<vmem>>, vector<1x128xf32>
    %28 = vector.broadcast %27 : vector<1x128xf32> to vector<128x128xf32>
    %29 = arith.addf %26, %28 : vector<128x128xf32>
    %c0_23 = arith.constant 0 : index
    %c0_24 = arith.constant 0 : index
    %30 = vector.load %arg10[%c0_23, %c0_24] : memref<128x128xf32, #tpu.memory_space<vmem>>, vector<128x128xf32>
    tpu.vector_store %arg10[%c0_23, %c0_24], %29 {strides = array<i32>} : memref<128x128xf32, #tpu.memory_space<vmem>>, vector<128x128xf32>,
    return
  }
  func.func @transform_0(%arg0: i32) -> (i32, i32) {
    %c0_i32 = arith.constant 0 : i32
    %c0_i32_0 = arith.constant 0 : i32
    return %arg0, %c0_i32 : i32, i32
  }
  func.func @transform_1(%arg0: i32) -> (i32, i32) {
    %c0_i32 = arith.constant 0 : i32
    %c0_i32_0 = arith.constant 0 : i32
    %c0_i32_1 = arith.constant 0 : i32
    return %c0_i32, %c0_i32_0 : i32, i32
  }
  func.func @transform_2(%arg0: i32) -> (i32, i32) {
    %c0_i32 = arith.constant 0 : i32
    %c0_i32_0 = arith.constant 0 : i32
    %c0_i32_1 = arith.constant 0 : i32
    return %c0_i32, %c0_i32_0 : i32, i32
  }
  func.func @transform_3(%arg0: i32) -> (i32, i32) {
    %c0_i32 = arith.constant 0 : i32
    %c0_i32_0 = arith.constant 0 : i32
    %c0_i32_1 = arith.constant 0 : i32
    return %c0_i32, %c0_i32_0 : i32, i32
  }
  func.func @transform_4(%arg0: i32) -> (i32, i32) {
    %c0_i32 = arith.constant 0 : i32
    %c0_i32_0 = arith.constant 0 : i32
    %c0_i32_1 = arith.constant 0 : i32
    return %c0_i32, %c0_i32_0 : i32, i32
  }
  func.func @transform_5(%arg0: i32) -> (i32, i32) {
    %c0_i32 = arith.constant 0 : i32
    %c0_i32_0 = arith.constant 0 : i32
    %c0_i32_1 = arith.constant 0 : i32
    return %c0_i32, %c0_i32_0 : i32, i32
  }
  func.func @transform_6(%arg0: i32) -> (i32, i32) {
    %c0_i32 = arith.constant 0 : i32
    %c0_i32_0 = arith.constant 0 : i32
    %c0_i32_1 = arith.constant 0 : i32
    return %c0_i32, %c0_i32_0 : i32, i32
  }
  func.func @transform_7(%arg0: i32) -> (i32, i32) {
    %c0_i32 = arith.constant 0 : i32
    %c0_i32_0 = arith.constant 0 : i32
    %c0_i32_1 = arith.constant 0 : i32
    return %c0_i32, %c0_i32_0 : i32, i32
  }
  func.func @transform_8(%arg0: i32) -> (i32, i32) {
    %c0_i32 = arith.constant 0 : i32
    %c0_i32_0 = arith.constant 0 : i32
    %c0_i32_1 = arith.constant 0 : i32
    return %c0_i32, %c0_i32_0 : i32, i32
  }
  func.func @transform_9(%arg0: i32) -> (i32, i32) {
    %c0_i32 = arith.constant 0 : i32
    %c0_i32_0 = arith.constant 0 : i32
    return %arg0, %c0_i32 : i32, i32
  }
}

</mosaic_0001>

<bundles_post_ra>
// kernel: tpu_custom_call.1
= control target key start
LH: loop header
LB: loop body
LE: loop exit
PB: predicated region body
PF: predicated region fallthrough
CT: control target
= control target key end

     0   :  { %14 = vsyncpa [#allocation3], 0  ;;  %s3058_s0 = inlined_call_operand.hbm [shape: bf16[128,1024], index: 0, kind: input, shape index: {}]   ;;  %s3059_s1 = inlined_call_operand.hbm [shape: bf16[1024,128], index: 1, kind: input, shape index: {}]   ;;  %s3060_s2 = inlined_call_operand.vmem [shape: f32[1,128], index: 2, kind: input, shape index: {}]   ;;  %s3061_s3 = inlined_call_operand.hbm [shape: bf16[128,128], index: 3, kind: input, shape index: {}]   ;;  %s3062_s4 = inlined_call_operand.vmem [shape: f32[1,128], index: 4, kind: input, shape index: {}]   ;;  %s3063_s5 = inlined_call_operand.hbm [shape: bf16[128,128], index: 5, kind: input, shape index: {}]   ;;  %s3064_s6 = inlined_call_operand.vmem [shape: f32[1,128], index: 6, kind: input, shape index: {}]   ;;  %s3065_s7 = inlined_call_operand.hbm [shape: bf16[128,128], index: 7, kind: input, shape index: {}]   ;;  %s3066_s8 = inlined_call_operand.vmem [shape: f32[1,128], index: 8, kind: input, shape index: {}]   ;;  %s3067_s9 = inlined_call_operand.hbm [shape: f32[128,128], index: 9, kind: output, shape index: {}]  }
   0x1   :  { %15 = vsyncpa [#allocation6], 0 }
   0x2   :  { %16 = vsyncpa [#allocation9], 0 }
   0x3   :  { %17 = vsyncpa [#allocation4], 0  ;;  %s2816_s30 = smov [#allocation5]   ;;  %s2676_s13 = scalar_lea.hbm %s3059_s1, 8192 }
   0x4   :  { %s35_s10 = sshll.u32 %s2816_s30, 4  ;;  %p2677_p0 = scmp.ne.s32.totalorder %s3059_s1, %s2676_s13  ;;  %s36_s10 = int_to_ptr.vmem [resolvable:$true] %s35_s10 }
   0x5   :  { %p2680_p1 = scmp.lt.u32.totalorder %s2676_s13, %s3059_s1 }
   0x7   :  { %p2682_p2 = pnand %p2680_p1, %p2677_p0 }
   0x9   :  { %2685 = shalt.err (!%p2682_p2)
}
   0xa   :  { %s2686_s18 = scalar_lea.vmem %s36_s10, 8192  ;;  %p2691_p4 = scmp.lt.s32.totalorder %s36_s10, %s36_s10 }
   0xb   :  { %p2687_p3 = scmp.ne.s32.totalorder %s36_s10, %s2686_s18  ;;  %p2692_p5 = scmp.lt.s32.totalorder %s2686_s18, %s2686_s18 }
   0xd   :  { %p2693_p6 = por %p2692_p5, %p2691_p4 }
   0xf   :  { %p2694_p7 = pnand %p2693_p6, %p2687_p3 }
  0x11   :  { %2697 = shalt.err (!%p2694_p7)
}
  0x12   :  { %s2817_s19 = smov 64   ;;  %s2818_s20 = smov 4  }
  0x13   :  { %41 = dma.hbm_to_vmem [thread:$0]  %s3059_s1, 8192, %s36_s10, [#allocation6], %s2817_s19, %s2817_s19, %s2818_s20  }
  0x14   :  { %s2819_s23 = smov [#allocation8]   ;;  %s2820_s25 = smov [#allocation2]  }
  0x15   :  { %s63_s24 = sshll.u32 %s2819_s23, 4  ;;  %s23_s26 = sshll.u32 %s2820_s25, 4  ;;  %s64_s24 = int_to_ptr.vmem [resolvable:$true] %s63_s24  ;;  %s24_s26 = int_to_ptr.vmem [resolvable:$true] %s23_s26 }
  0x16   :  { %s2698_s29 = scalar_lea.hbm %s3063_s5, 1024 }
  0x17   :  { %p2699_p8 = scmp.ne.s32.totalorder %s3063_s5, %s2698_s29  ;;  %p2702_p9 = scmp.lt.u32.totalorder %s2698_s29, %s3063_s5 }
  0x19   :  { %p2704_p10 = pnand %p2702_p9, %p2699_p8 }
  0x1b   :  { %2707 = shalt.err (!%p2704_p10)
}
  0x1c   :  { %s2708_s1 = scalar_lea.vmem %s64_s24, 1024  ;;  %p2713_p12 = scmp.lt.s32.totalorder %s64_s24, %s64_s24 }
  0x1d   :  { %p2709_p11 = scmp.ne.s32.totalorder %s64_s24, %s2708_s1  ;;  %p2714_p13 = scmp.lt.s32.totalorder %s2708_s1, %s2708_s1 }
  0x1f   :  { %p2715_p0 = por %p2714_p13, %p2713_p12 }
  0x21   :  { %p2716_p1 = pnand %p2715_p0, %p2709_p11 }
  0x23   :  { %2719 = shalt.err (!%p2716_p1)
}
  0x24   :  { %69 = dma.hbm_to_vmem [thread:$0]  %s3063_s5, 1024, %s64_s24, [#allocation9], %s2817_s19, %s2817_s19, %s2818_s20  }
  0x25   :  { %s2720_s17 = scalar_lea.hbm %s3058_s0, 8192 }
  0x26   :  { %p2721_p2 = scmp.ne.s32.totalorder %s3058_s0, %s2720_s17  ;;  %p2724_p3 = scmp.lt.u32.totalorder %s2720_s17, %s3058_s0 }
  0x28   :  { %p2726_p4 = pnand %p2724_p3, %p2721_p2 }
  0x2a   :  { %2729 = shalt.err (!%p2726_p4)
}
  0x2b   :  { %s2730_s25 = scalar_lea.vmem %s24_s26, 8192  ;;  %p2735_p6 = scmp.lt.s32.totalorder %s24_s26, %s24_s26 }
  0x2c   :  { %p2731_p5 = scmp.ne.s32.totalorder %s24_s26, %s2730_s25  ;;  %p2736_p7 = scmp.lt.s32.totalorder %s2730_s25, %s2730_s25 }
  0x2e   :  { %p2737_p8 = por %p2736_p7, %p2735_p6 }
  0x30   :  { %p2738_p9 = pnand %p2737_p8, %p2731_p5 }
  0x32   :  { %2741 = shalt.err (!%p2738_p9)
}
  0x33   :  { %s2821_s5 = smov 512   ;;  %s2822_s24 = smov 32  }
  0x34   :  { %29 = dma.hbm_to_vmem [thread:$0]  %s3058_s0, 8192, %s24_s26, [#allocation3], %s2821_s5, %s2821_s5, %s2822_s24  }
  0x35   :  { %s2823_s29 = smov [#allocation7]   ;;  %s2824_s11 = smov [#allocation10]  }
  0x36   :  { %s49_s30 = sshll.u32 %s2823_s29, 4  ;;  %s77_s12 = sshll.u32 %s2824_s11, 4  ;;  %s50_s30 = int_to_ptr.vmem [resolvable:$true] %s49_s30  ;;  %s78_s12 = int_to_ptr.vmem [resolvable:$true] %s77_s12 }
  0x37   :  { %s2742_s10 = scalar_lea.hbm %s3061_s3, 1024 }
  0x38   :  { %p2743_p10 = scmp.ne.s32.totalorder %s3061_s3, %s2742_s10  ;;  %p2746_p11 = scmp.lt.u32.totalorder %s2742_s10, %s3061_s3 }
  0x3a   :  { %p2748_p12 = pnand %p2746_p11, %p2743_p10 }
  0x3c   :  { %2751 = shalt.err (!%p2748_p12)
}
  0x3d   :  { %s2752_s0 = scalar_lea.vmem %s50_s30, 1024  ;;  %p2757_p0 = scmp.lt.s32.totalorder %s50_s30, %s50_s30 }
  0x3e   :  { %p2753_p13 = scmp.ne.s32.totalorder %s50_s30, %s2752_s0  ;;  %p2758_p1 = scmp.lt.s32.totalorder %s2752_s0, %s2752_s0 }
  0x40   :  { %p2759_p2 = por %p2758_p1, %p2757_p0 }
  0x42   :  { %p2760_p3 = pnand %p2759_p2, %p2753_p13 }
  0x44   :  { %2763 = shalt.err (!%p2760_p3)
}
  0x45   :  { %55 = dma.hbm_to_vmem [thread:$0]  %s3061_s3, 1024, %s50_s30, [#allocation6], %s2817_s19, %s2817_s19, %s2818_s20  }
  0x46   :  { %s2764_s23 = scalar_lea.hbm %s3065_s7, 1024 }
  0x47   :  { %p2765_p4 = scmp.ne.s32.totalorder %s3065_s7, %s2764_s23  ;;  %p2768_p5 = scmp.lt.u32.totalorder %s2764_s23, %s3065_s7 }
  0x49   :  { %p2770_p6 = pnand %p2768_p5, %p2765_p4 }
  0x4b   :  { %2773 = shalt.err (!%p2770_p6)
}
  0x4c   :  { %s2774_s28 = scalar_lea.vmem %s78_s12, 1024  ;;  %p2779_p8 = scmp.lt.s32.totalorder %s78_s12, %s78_s12 }
  0x4d   :  { %p2775_p7 = scmp.ne.s32.totalorder %s78_s12, %s2774_s28  ;;  %p2780_p9 = scmp.lt.s32.totalorder %s2774_s28, %s2774_s28 }
  0x4f   :  { %p2781_p10 = por %p2780_p9, %p2779_p8 }
  0x51   :  { %p2782_p11 = pnand %p2781_p10, %p2775_p7 }
  0x53   :  { %2785 = shalt.err (!%p2782_p11)
}
  0x54   :  { %83 = dma.hbm_to_vmem [thread:$0]  %s3065_s7, 1024, %s78_s12, [#allocation9], %s2817_s19, %s2817_s19, %s2818_s20  }
  0x55   :  { %2808 = dma.done.wait [#allocation3], 8192  }
  0x56   :  { %2809 = vsyncadd [#allocation3], 4294959104 }
  0x57   :  { %2810 = dma.done.wait [#allocation6], 9216  }
  0x58   :  { %2811 = vsyncadd [#allocation6], 4294958080 }
  0x59   :  { %2812 = dma.done.wait [#allocation9], 2048  }
  0x5a   :  { %2813 = vsyncadd [#allocation9], 4294965248  ;;  %v2588_v0 = vld [vmem:[#allocation5 + $0x40] sm:$0xff]   ;;  %v2592_v4 = vld [vmem:[#allocation5 + $0x48] sm:$0xff]  }
  0x5b   :  { %v2589_v1 = vld [vmem:[#allocation5 + $0xc0] sm:$0xff]   ;;  %2160 = vmatprep.subr.bf16.mxu0 %v2588_v0  ;;  %v2593_v5 = vld [vmem:[#allocation5 + $0xc8] sm:$0xff]   ;;  %v2596_v8 = vld [vmem:[#allocation5 + $0x50] sm:$0xff]  }
  0x5c   :  { %v2590_v2 = vld [vmem:[#allocation5] sm:$0xff]   ;;  %2224 = vmatprep.subr.bf16.mxu1 %v2589_v1  ;;  %v2594_v6 = vld [vmem:[#allocation5 + $0x8] sm:$0xff]   ;;  %v2597_v9 = vld [vmem:[#allocation5 + $0xd0] sm:$0xff]  }
  0x5d   :  { %v2591_v3 = vld [vmem:[#allocation5 + $0x80] sm:$0xff]   ;;  %2161 = vmatpush3.bf16.msra.mxu0 %v2590_v2  ;;  %v2595_v7 = vld [vmem:[#allocation5 + $0x88] sm:$0xff]   ;;  %v2598_v10 = vld [vmem:[#allocation5 + $0x10] sm:$0xff]  }
  0x5e   :  { %2225 = vmatpush3.bf16.msra.mxu1 %v2591_v3  ;;  %2162 = vmatprep.subr.bf16.mxu0 %v2592_v4  ;;  %v2599_v11 = vld [vmem:[#allocation5 + $0x90] sm:$0xff]   ;;  %v2600_v12 = vld [vmem:[#allocation5 + $0x58] sm:$0xff]   ;;  %v2604_v16 = vld [vmem:[#allocation5 + $0x60] sm:$0xff]  }
  0x5f   :  { %2226 = vmatprep.subr.bf16.mxu1 %v2593_v5  ;;  %v2601_v13 = vld [vmem:[#allocation5 + $0xd8] sm:$0xff]   ;;  %v2605_v17 = vld [vmem:[#allocation5 + $0xe0] sm:$0xff]   ;;  %v2608_v20 = vld [vmem:[#allocation5 + $0x68] sm:$0xff]  }
  0x60   :  { %v2602_v14 = vld [vmem:[#allocation5 + $0x18] sm:$0xff]   ;;  %v2606_v18 = vld [vmem:[#allocation5 + $0x20] sm:$0xff]   ;;  %v2609_v21 = vld [vmem:[#allocation5 + $0xe8] sm:$0xff]  }
  0x61   :  { %2163 = vmatpush3.bf16.msra.mxu0 %v2594_v6  ;;  %v2603_v15 = vld [vmem:[#allocation5 + $0x98] sm:$0xff]   ;;  %v2607_v19 = vld [vmem:[#allocation5 + $0xa0] sm:$0xff]   ;;  %v2610_v22 = vld [vmem:[#allocation5 + $0x28] sm:$0xff]  }
  0x62   :  { %2227 = vmatpush3.bf16.msra.mxu1 %v2595_v7  ;;  %2164 = vmatprep.subr.bf16.mxu0 %v2596_v8  ;;  %v2611_v23 = vld [vmem:[#allocation5 + $0xa8] sm:$0xff]   ;;  %v2612_v24 = vld [vmem:[#allocation5 + $0x70] sm:$0xff]   ;;  %v2616_v28 = vld [vmem:[#allocation5 + $0x78] sm:$0xff]  }
  0x63   :  { %2228 = vmatprep.subr.bf16.mxu1 %v2597_v9  ;;  %v2613_v25 = vld [vmem:[#allocation5 + $0xf0] sm:$0xff]   ;;  %v2617_v29 = vld [vmem:[#allocation5 + $0xf8] sm:$0xff]   ;;  %v102_v32 = vld [vmem:[#allocation2] sm:$0xff] }
  0x64   :  { %v2614_v26 = vld [vmem:[#allocation5 + $0x30] sm:$0xff]   ;;  %v2618_v30 = vld [vmem:[#allocation5 + $0x38] sm:$0xff]   ;;  %v106_v33 = vld [vmem:[#allocation2 + $0x20] sm:$0xff] }
  0x65   :  { %2165 = vmatpush3.bf16.msra.mxu0 %v2598_v10  ;;  %v2615_v27 = vld [vmem:[#allocation5 + $0xb0] sm:$0xff]   ;;  %v2619_v31 = vld [vmem:[#allocation5 + $0xb8] sm:$0xff]   ;;  %v103_v34 = vld [vmem:[#allocation2 + $0x8] sm:$0xff]  ;;  %v2005_v35 = vcombine.low %v102_v32, %v106_v33  ;;  %v2006_v36 = vcombine.high %v102_v32, %v106_v33 }
  0x66   :  { %2229 = vmatpush3.bf16.msra.mxu1 %v2599_v11  ;;  %2166 = vmatprep.subr.bf16.mxu0 %v2600_v12  ;;  %v107_v37 = vld [vmem:[#allocation2 + $0x28] sm:$0xff]  ;;  %v2620_v40 = vld [vmem:[#allocation5 + $0x140] sm:$0xff]   ;;  %v2628_v62 = vld [vmem:[#allocation5 + $0x150] sm:$0xff]  }
  0x67   :  { %2230 = vmatprep.subr.bf16.mxu1 %v2601_v13  ;;  %v2007_v38 = vcombine.low %v103_v34, %v107_v37  ;;  %v2008_v39 = vcombine.high %v103_v34, %v107_v37  ;;  %1037 = vmatprep.mubr.bf16.mxu0 %v2006_v36  ;;  %v2621_v41 = vld [vmem:[#allocation5 + $0x100] sm:$0xff]   ;;  %v111_v47 = vld [vmem:[#allocation2 + $0x48] sm:$0xff]  ;;  %v2629_v63 = vld [vmem:[#allocation5 + $0x110] sm:$0xff]  }
  0x68   :  { %v2622_v42 = vld [vmem:[#allocation5 + $0x1c0] sm:$0xff]   ;;  %v115_v48 = vld [vmem:[#allocation2 + $0x68] sm:$0xff]  ;;  %v2630_v0 = vld [vmem:[#allocation5 + $0x1d0] sm:$0xff]  }
  0x69   :  { %2167 = vmatpush3.bf16.msra.mxu0 %v2602_v14  ;;  %1134 = vmatprep.mubr.bf16.mxu1 %v2008_v39  ;;  %v2623_v43 = vld [vmem:[#allocation5 + $0x180] sm:$0xff]   ;;  %v2016_v49 = vcombine.high %v111_v47, %v115_v48  ;;  %v2624_v50 = vld [vmem:[#allocation5 + $0x148] sm:$0xff]   ;;  %v2015_v53 = vcombine.low %v111_v47, %v115_v48  ;;  %v2631_v1 = vld [vmem:[#allocation5 + $0x190] sm:$0xff]  }
  0x6a   :  { %2231 = vmatpush3.bf16.msra.mxu1 %v2603_v15  ;;  %2168 = vmatprep.subr.bf16.mxu0 %v2604_v16  ;;  %v110_v44 = vld [vmem:[#allocation2 + $0x40] sm:$0xff]  ;;  %v2625_v52 = vld [vmem:[#allocation5 + $0x108] sm:$0xff]   ;;  %v2632_v10 = vld [vmem:[#allocation5 + $0x158] sm:$0xff]  }
  0x6b   :  { %2232 = vmatprep.subr.bf16.mxu1 %v2605_v17  ;;  %v114_v45 = vld [vmem:[#allocation2 + $0x60] sm:$0xff]  ;;  %v2626_v54 = vld [vmem:[#allocation5 + $0x1c8] sm:$0xff]   ;;  %v2633_v11 = vld [vmem:[#allocation5 + $0x118] sm:$0xff]  }
  0x6c   :  { %v2014_v46 = vcombine.high %v110_v44, %v114_v45  ;;  %v2013_v51 = vcombine.low %v110_v44, %v114_v45  ;;  %v2627_v55 = vld [vmem:[#allocation5 + $0x188] sm:$0xff]   ;;  %v118_v56 = vld [vmem:[#allocation2 + $0x80] sm:$0xff]  ;;  %v2634_v12 = vld [vmem:[#allocation5 + $0x1d8] sm:$0xff]  }
  0x6d   :  { %2169 = vmatpush3.bf16.msra.mxu0 %v2606_v18  ;;  %v122_v57 = vld [vmem:[#allocation2 + $0xa0] sm:$0xff]  ;;  %v119_v58 = vld [vmem:[#allocation2 + $0x88] sm:$0xff]  ;;  %v2635_v13 = vld [vmem:[#allocation5 + $0x198] sm:$0xff]  }
  0x6e   :  { %2233 = vmatpush3.bf16.msra.mxu1 %v2607_v19  ;;  %2170 = vmatprep.subr.bf16.mxu0 %v2608_v20  ;;  %v123_v59 = vld [vmem:[#allocation2 + $0xa8] sm:$0xff]  ;;  %v2022_v60 = vcombine.high %v118_v56, %v122_v57  ;;  %v2021_v2 = vcombine.low %v118_v56, %v122_v57  ;;  %v126_v3 = vld [vmem:[#allocation2 + $0xc0] sm:$0xff]  ;;  %v2645_v39 = vld [vmem:[#allocation5 + $0x130] sm:$0xff]  }
  0x6f   :  { %2234 = vmatprep.subr.bf16.mxu1 %v2609_v21  ;;  %v2024_v61 = vcombine.high %v119_v58, %v123_v59  ;;  %v130_v4 = vld [vmem:[#allocation2 + $0xe0] sm:$0xff]  ;;  %v127_v5 = vld [vmem:[#allocation2 + $0xc8] sm:$0xff]  ;;  %v2023_v6 = vcombine.low %v119_v58, %v123_v59  ;;  %v2649_v48 = vld [vmem:[#allocation5 + $0x138] sm:$0xff]  }
  0x70   :  { %v2030_v7 = vcombine.high %v126_v3, %v130_v4  ;;  %v131_v8 = vld [vmem:[#allocation2 + $0xe8] sm:$0xff]  ;;  %v134_v14 = vld [vmem:[#allocation2 + $0x100] sm:$0xff]  ;;  %v2029_v19 = vcombine.low %v126_v3, %v130_v4 }
  0x71   :  { %2171 = vmatpush3.bf16.msra.mxu0 %v2610_v22  ;;  %v2032_v9 = vcombine.high %v127_v5, %v131_v8  ;;  %v138_v15 = vld [vmem:[#allocation2 + $0x120] sm:$0xff]  ;;  %v135_v16 = vld [vmem:[#allocation2 + $0x108] sm:$0xff]  ;;  %v2031_v21 = vcombine.low %v127_v5, %v131_v8  ;;  %v113_v8 = vld [vmem:[#allocation2 + $0x58] sm:$0xff] }
  0x72   :  { %2235 = vmatpush3.bf16.msra.mxu1 %v2611_v23  ;;  %2172 = vmatprep.subr.bf16.mxu0 %v2612_v24  ;;  %v139_v17 = vld [vmem:[#allocation2 + $0x128] sm:$0xff]  ;;  %v2636_v18 = vld [vmem:[#allocation5 + $0x160] sm:$0xff]   ;;  %v2038_v22 = vcombine.high %v134_v14, %v138_v15  ;;  %v2037_v34 = vcombine.low %v134_v14, %v138_v15  ;;  %v120_v14 = vld [vmem:[#allocation2 + $0x90] sm:$0xff] }
  0x73   :  { %2236 = vmatprep.subr.bf16.mxu1 %v2613_v25  ;;  %v2637_v20 = vld [vmem:[#allocation5 + $0x120] sm:$0xff]   ;;  %v2040_v24 = vcombine.high %v135_v16, %v139_v17  ;;  %v2642_v32 = vld [vmem:[#allocation5 + $0x1e8] sm:$0xff]   ;;  %v124_v15 = vld [vmem:[#allocation2 + $0xb0] sm:$0xff] }
  0x74   :  { %v2638_v23 = vld [vmem:[#allocation5 + $0x1e0] sm:$0xff]   ;;  %v2643_v33 = vld [vmem:[#allocation5 + $0x1a8] sm:$0xff]  }
  0x75   :  { %2173 = vmatpush3.bf16.msra.mxu0 %v2614_v26  ;;  %v2639_v25 = vld [vmem:[#allocation5 + $0x1a0] sm:$0xff]   ;;  %v151_v44 = vld [vmem:[#allocation2 + $0x188] sm:$0xff] }
  0x76   :  { %2237 = vmatpush3.bf16.msra.mxu1 %v2615_v27  ;;  %2174 = vmatprep.subr.bf16.mxu0 %v2616_v28  ;;  %v142_v26 = vld [vmem:[#allocation2 + $0x140] sm:$0xff]  ;;  %v2640_v28 = vld [vmem:[#allocation5 + $0x168] sm:$0xff]  }
  0x77   :  { %2238 = vmatprep.subr.bf16.mxu1 %v2617_v29  ;;  %v146_v27 = vld [vmem:[#allocation2 + $0x160] sm:$0xff]  ;;  %v143_v29 = vld [vmem:[#allocation2 + $0x148] sm:$0xff] }
  0x78   :  { %v2046_v36 = vcombine.high %v142_v26, %v146_v27  ;;  %v155_v45 = vld [vmem:[#allocation2 + $0x1a8] sm:$0xff]  ;;  %v2045_v47 = vcombine.low %v142_v26, %v146_v27  ;;  %v2025_v26 = vcombine.low %v120_v14, %v124_v15 }
  0x79   :  { %2175 = vmatpush3.bf16.msra.mxu0 %v2618_v30  ;;  %v147_v30 = vld [vmem:[#allocation2 + $0x168] sm:$0xff]  ;;  %v2055_v59 = vcombine.low %v151_v44, %v155_v45 }
  0x7a   :  { %2239 = vmatpush3.bf16.msra.mxu1 %v2619_v31  ;;  %2288 = vmatprep.subr.bf16.mxu0 %v2620_v40  ;;  %v2641_v31 = vld [vmem:[#allocation5 + $0x128] sm:$0xff]   ;;  %v2048_v37 = vcombine.high %v143_v29, %v147_v30  ;;  %v2646_v40 = vld [vmem:[#allocation5 + $0x1f0] sm:$0xff]  }
  0x7b   :  { %2352 = vmatprep.subr.bf16.mxu1 %v2622_v42  ;;  %v154_v42 = vld [vmem:[#allocation2 + $0x1a0] sm:$0xff]  ;;  %v159_v56 = vld [vmem:[#allocation2 + $0x1c8] sm:$0xff] }
  0x7c   :  { %1038 = vmatmul.mubr.bf16.vlgmr.msra.gmra.mrb[0].mxu0 %v2005_v35  ;;  %v2039_v35 = vcombine.low %v135_v16, %v139_v17  ;;  %v163_v57 = vld [vmem:[#allocation2 + $0x1e8] sm:$0xff]  ;;  %v121_v16 = vld [vmem:[#allocation2 + $0x98] sm:$0xff] }
  0x7d   :  { %1135 = vmatmul.mubr.bf16.vlgmr.msra.gmra.mrb[0].mxu1 %v2007_v38  ;;  %2289 = vmatpush3.bf16.msra.mxu0 %v2621_v41  ;;  %v2644_v38 = vld [vmem:[#allocation5 + $0x170] sm:$0xff]   ;;  %v150_v41 = vld [vmem:[#allocation2 + $0x180] sm:$0xff]  ;;  %v2063_v3 = vcombine.low %v159_v56, %v163_v57  ;;  %v125_v17 = vld [vmem:[#allocation2 + $0xb8] sm:$0xff] }
  0x7e   :  { %2353 = vmatpush3.bf16.msra.mxu1 %v2623_v43  ;;  %1045 = vmatprep.mubr.bf16.mxu0 %v2014_v46  ;;  %v2647_v43 = vld [vmem:[#allocation5 + $0x1b0] sm:$0xff]   ;;  %v2648_v46 = vld [vmem:[#allocation5 + $0x178] sm:$0xff]   ;;  %v2053_v58 = vcombine.low %v150_v41, %v154_v42  ;;  %v2027_v27 = vcombine.low %v121_v16, %v125_v17 }
  0x7f   :  { %1142 = vmatprep.mubr.bf16.mxu1 %v2016_v49  ;;  %2290 = vmatprep.subr.bf16.mxu0 %v2624_v50  ;;  %v2047_v49 = vcombine.low %v143_v29, %v147_v30  ;;  %v2054_v50 = vcombine.high %v150_v41, %v154_v42  ;;  %v136_v30 = vld [vmem:[#allocation2 + $0x110] sm:$0xff]  ;;  %v149_v41 = vld [vmem:[#allocation2 + $0x178] sm:$0xff] }
  0x80   :  { %2354 = vmatprep.subr.bf16.mxu1 %v2626_v54  ;;  %v158_v54 = vld [vmem:[#allocation2 + $0x1c0] sm:$0xff] }
  0x81   :  { %2291 = vmatpush3.bf16.msra.mxu0 %v2625_v52  ;;  %v2056_v52 = vcombine.high %v151_v44, %v155_v45 }
  0x82   :  { %2355 = vmatpush3.bf16.msra.mxu1 %v2627_v55  ;;  %2292 = vmatprep.subr.bf16.mxu0 %v2628_v62  ;;  %v162_v55 = vld [vmem:[#allocation2 + $0x1e0] sm:$0xff]  ;;  %v104_v62 = vld [vmem:[#allocation2 + $0x10] sm:$0xff] }
  0x83   :  { %2356 = vmatprep.subr.bf16.mxu1 %v2630_v0  ;;  %v105_v0 = vld [vmem:[#allocation2 + $0x18] sm:$0xff] }
  0x84   :  { %1046 = vmatmul.mubr.bf16.gmra.mrb[4].mxu0 %v2013_v51  ;;  %v2650_v51 = vld [vmem:[#allocation5 + $0x1f8] sm:$0xff]  }
  0x85   :  { %1143 = vmatmul.mubr.bf16.gmra.mrb[4].mxu1 %v2015_v53  ;;  %1053 = vmatprep.mubr.bf16.mxu0 %v2022_v60  ;;  %v2651_v53 = vld [vmem:[#allocation5 + $0x1b8] sm:$0xff]   ;;  %v2062_v60 = vcombine.high %v158_v54, %v162_v55 }
  0x86   :  { %1150 = vmatprep.mubr.bf16.mxu1 %v2024_v61  ;;  %2293 = vmatpush3.bf16.msra.mxu0 %v2629_v63  ;;  %v2064_v61 = vcombine.high %v159_v56, %v163_v57  ;;  %v108_v63 = vld [vmem:[#allocation2 + $0x30] sm:$0xff]  ;;  %v161_v56 = vld [vmem:[#allocation2 + $0x1d8] sm:$0xff] }
  0x87   :  { %2357 = vmatpush3.bf16.msra.mxu1 %v2631_v1  ;;  %2294 = vmatprep.subr.bf16.mxu0 %v2632_v10  ;;  %v109_v1 = vld [vmem:[#allocation2 + $0x38] sm:$0xff]  ;;  %v2010_v4 = vcombine.high %v104_v62, %v108_v63  ;;  %v2009_v10 = vcombine.low %v104_v62, %v108_v63 }
  0x88   :  { %2358 = vmatprep.subr.bf16.mxu1 %v2634_v12  ;;  %v2012_v5 = vcombine.high %v105_v0, %v109_v1  ;;  %v165_v57 = vld [vmem:[#allocation2 + $0x1f8] sm:$0xff] }
  0x89   :  { %v2067_v63 = vcombine.low %v161_v56, %v165_v57 }
  0x8a   :  { %2295 = vmatpush3.bf16.msra.mxu0 %v2633_v11  ;;  %v2011_v11 = vcombine.low %v105_v0, %v109_v1  ;;  %v2652_v0 = vld [vmem:[#allocation7] sm:$0xff]   ;;  %v2653_v1 = vld [vmem:[#allocation7 + $0x8] sm:$0xff]  }
  0x8b   :  { %2359 = vmatpush3.bf16.msra.mxu1 %v2635_v13  ;;  %2296 = vmatprep.subr.bf16.mxu0 %v2636_v18 }
  0x8c   :  { %1054 = vmatmul.mubr.bf16.gmra.mrb[8].mxu0 %v2021_v2  ;;  %2360 = vmatprep.subr.bf16.mxu1 %v2638_v23  ;;  %v2061_v2 = vcombine.low %v158_v54, %v162_v55  ;;  %v132_v23 = vld [vmem:[#allocation2 + $0xf0] sm:$0xff] }
  0x8d   :  { %1151 = vmatmul.mubr.bf16.gmra.mrb[8].mxu1 %v2023_v6  ;;  %1061 = vmatprep.mubr.bf16.mxu0 %v2030_v7  ;;  %v112_v6 = vld [vmem:[#allocation2 + $0x50] sm:$0xff] }
  0x8e   :  { %1158 = vmatprep.mubr.bf16.mxu1 %v2032_v9  ;;  %2297 = vmatpush3.bf16.msra.mxu0 %v2637_v20  ;;  %v116_v7 = vld [vmem:[#allocation2 + $0x70] sm:$0xff]  ;;  %v117_v9 = vld [vmem:[#allocation2 + $0x78] sm:$0xff]  ;;  %v2026_v20 = vcombine.high %v120_v14, %v124_v15 }
  0x8f   :  { %2361 = vmatpush3.bf16.msra.mxu1 %v2639_v25  ;;  %2298 = vmatprep.subr.bf16.mxu0 %v2640_v28  ;;  %v2018_v12 = vcombine.high %v112_v6, %v116_v7  ;;  %v2020_v13 = vcombine.high %v113_v8, %v117_v9  ;;  %v2017_v18 = vcombine.low %v112_v6, %v116_v7  ;;  %v133_v25 = vld [vmem:[#allocation2 + $0xf8] sm:$0xff]  ;;  %v160_v54 = vld [vmem:[#allocation2 + $0x1d0] sm:$0xff] }
  0x90   :  { %2362 = vmatprep.subr.bf16.mxu1 %v2642_v32  ;;  %v137_v32 = vld [vmem:[#allocation2 + $0x118] sm:$0xff]  ;;  %v164_v55 = vld [vmem:[#allocation2 + $0x1f0] sm:$0xff] }
  0x91   :  { %v2065_v62 = vcombine.low %v160_v54, %v164_v55  ;;  %v2658_v6 = vld [vmem:[#allocation7 + $0x30] sm:$0xff]   ;;  %v2659_v7 = vld [vmem:[#allocation7 + $0x38] sm:$0xff]  }
  0x92   :  { %2299 = vmatpush3.bf16.msra.mxu0 %v2641_v31  ;;  %v140_v31 = vld [vmem:[#allocation2 + $0x130] sm:$0xff] }
  0x93   :  { %2363 = vmatpush3.bf16.msra.mxu1 %v2643_v33  ;;  %2300 = vmatprep.subr.bf16.mxu0 %v2644_v38  ;;  %v141_v33 = vld [vmem:[#allocation2 + $0x138] sm:$0xff]  ;;  %v144_v38 = vld [vmem:[#allocation2 + $0x150] sm:$0xff]  ;;  %v2041_v42 = vcombine.low %v136_v30, %v140_v31 }
  0x94   :  { %1062 = vmatmul.mubr.bf16.gmra.mrb[12].mxu0 %v2029_v19  ;;  %2364 = vmatprep.subr.bf16.mxu1 %v2646_v40  ;;  %v2019_v19 = vcombine.low %v113_v8, %v117_v9  ;;  %v145_v40 = vld [vmem:[#allocation2 + $0x158] sm:$0xff] }
  0x95   :  { %1159 = vmatmul.mubr.bf16.gmra.mrb[12].mxu1 %v2031_v21  ;;  %1069 = vmatprep.mubr.bf16.mxu0 %v2038_v22  ;;  %v2028_v21 = vcombine.high %v121_v16, %v125_v17  ;;  %v128_v22 = vld [vmem:[#allocation2 + $0xd0] sm:$0xff]  ;;  %v2052_v45 = vcombine.high %v145_v40, %v149_v41 }
  0x96   :  { %1166 = vmatprep.mubr.bf16.mxu1 %v2040_v24  ;;  %2301 = vmatpush3.bf16.msra.mxu0 %v2645_v39  ;;  %v129_v24 = vld [vmem:[#allocation2 + $0xd8] sm:$0xff]  ;;  %v2034_v28 = vcombine.high %v128_v22, %v132_v23  ;;  %v148_v39 = vld [vmem:[#allocation2 + $0x170] sm:$0xff] }
  0x97   :  { %2365 = vmatpush3.bf16.msra.mxu1 %v2647_v43  ;;  %2302 = vmatprep.subr.bf16.mxu0 %v2648_v46  ;;  %v2036_v29 = vcombine.high %v129_v24, %v133_v25  ;;  %v2043_v43 = vcombine.low %v137_v32, %v141_v33  ;;  %v2050_v44 = vcombine.high %v144_v38, %v148_v39  ;;  %v152_v46 = vld [vmem:[#allocation2 + $0x190] sm:$0xff] }
  0x98   :  { %2366 = vmatprep.subr.bf16.mxu1 %v2650_v51  ;;  %v2051_v51 = vcombine.low %v145_v40, %v149_v41 }
  0x9a   :  { %2303 = vmatpush3.bf16.msra.mxu0 %v2649_v48  ;;  %v153_v48 = vld [vmem:[#allocation2 + $0x198] sm:$0xff] }
  0x9b   :  { %2367 = vmatpush3.bf16.msra.mxu1 %v2651_v53  ;;  %2464 = vmatprep.subr.bf16.mxu0 %v2652_v0 }
  0x9c   :  { %1070 = vmatmul.mubr.bf16.gmra.mrb[16].mxu0 %v2037_v34  ;;  %v2033_v34 = vcombine.low %v128_v22, %v132_v23 }
  0x9d   :  { %1167 = vmatmul.mubr.bf16.gmra.mrb[16].mxu1 %v2039_v35  ;;  %1077 = vmatprep.mubr.bf16.mxu0 %v2046_v36  ;;  %v2035_v35 = vcombine.low %v129_v24, %v133_v25  ;;  %v2042_v36 = vcombine.high %v136_v30, %v140_v31  ;;  %v2660_v24 = vld [vmem:[#allocation8] sm:$0xff]   ;;  %v2661_v25 = vld [vmem:[#allocation8 + $0x8] sm:$0xff]  }
  0x9e   :  { %1174 = vmatprep.mubr.bf16.mxu1 %v2048_v37  ;;  %v2044_v37 = vcombine.high %v137_v32, %v141_v33  ;;  %2496 = vmatprep.subr.bf16.mxu1 %v2660_v24  ;;  %v2662_v33 = vld [vmem:[#allocation8 + $0x10] sm:$0xff]  }
  0xa4   :  { %1078 = vmatmul.mubr.bf16.gmra.mrb[20].mxu0 %v2045_v47  ;;  %v156_v47 = vld [vmem:[#allocation2 + $0x1b0] sm:$0xff] }
  0xa5   :  { %1175 = vmatmul.mubr.bf16.gmra.mrb[20].mxu1 %v2047_v49  ;;  %1085 = vmatprep.mubr.bf16.mxu0 %v2054_v50  ;;  %v157_v49 = vld [vmem:[#allocation2 + $0x1b8] sm:$0xff]  ;;  %v2049_v50 = vcombine.low %v144_v38, %v148_v39 }
  0xa6   :  { %1182 = vmatprep.mubr.bf16.mxu1 %v2056_v52  ;;  %v2058_v52 = vcombine.high %v152_v46, %v156_v47  ;;  %v2060_v53 = vcombine.high %v153_v48, %v157_v49 }
  0xac   :  { %1086 = vmatmul.mubr.bf16.gmra.mrb[24].mxu0 %v2053_v58  ;;  %v2057_v58 = vcombine.low %v152_v46, %v156_v47 }
  0xad   :  { %1183 = vmatmul.mubr.bf16.gmra.mrb[24].mxu1 %v2055_v59  ;;  %1093 = vmatprep.mubr.bf16.mxu0 %v2062_v60  ;;  %v2059_v59 = vcombine.low %v153_v48, %v157_v49  ;;  %v2066_v60 = vcombine.high %v160_v54, %v164_v55 }
  0xae   :  { %1190 = vmatprep.mubr.bf16.mxu1 %v2064_v61  ;;  %v2068_v61 = vcombine.high %v161_v56, %v165_v57 }
  0xb4   :  { %1094 = vmatmul.mubr.bf16.gmra.mrb[28].mxu0 %v2061_v2  ;;  %v2654_v2 = vld [vmem:[#allocation7 + $0x10] sm:$0xff]  }
  0xb5   :  { %1191 = vmatmul.mubr.bf16.gmra.mrb[28].mxu1 %v2063_v3  ;;  %1231 = vmatprep.mubr.bf16.mxu0 %v2010_v4  ;;  %v2655_v3 = vld [vmem:[#allocation7 + $0x18] sm:$0xff]   ;;  %v2656_v4 = vld [vmem:[#allocation7 + $0x20] sm:$0xff]  }
  0xb6   :  { %1328 = vmatprep.mubr.bf16.mxu1 %v2012_v5  ;;  %v2657_v5 = vld [vmem:[#allocation7 + $0x28] sm:$0xff]  }
  0xbc   :  { %1232 = vmatmul.mubr.bf16.vlgmr.msra.gmra.mrb[32].mxu0 %v2009_v10  ;;  %v2953_v10 = vld [vmem:[%s3060_s2] ss:$0 sm:$0xff] }
  0xbd   :  { %1329 = vmatmul.mubr.bf16.vlgmr.msra.gmra.mrb[32].mxu1 %v2011_v11  ;;  %1239 = vmatprep.mubr.bf16.mxu0 %v2018_v12 }
  0xbe   :  { %1336 = vmatprep.mubr.bf16.mxu1 %v2020_v13  ;;  %2465 = vmatpush3.bf16.msra.mxu0 %v2652_v0 }
  0xbf   :  { %2466 = vmatprep.subr.bf16.mxu0 %v2653_v1  ;;  %2497 = vmatpush3.bf16.msra.mxu1 %v2660_v24 }
  0xc0   :  { %2498 = vmatprep.subr.bf16.mxu1 %v2661_v25 }
  0xc2   :  { %2467 = vmatpush3.bf16.msra.mxu0 %v2653_v1 }
  0xc3   :  { %2468 = vmatprep.subr.bf16.mxu0 %v2654_v2  ;;  %2499 = vmatpush3.bf16.msra.mxu1 %v2661_v25 }
  0xc4   :  { %1240 = vmatmul.mubr.bf16.gmra.mrb[36].mxu0 %v2017_v18  ;;  %2500 = vmatprep.subr.bf16.mxu1 %v2662_v33 }
  0xc5   :  { %1337 = vmatmul.mubr.bf16.gmra.mrb[36].mxu1 %v2019_v19  ;;  %1247 = vmatprep.mubr.bf16.mxu0 %v2026_v20 }
  0xc6   :  { %1344 = vmatprep.mubr.bf16.mxu1 %v2028_v21  ;;  %2469 = vmatpush3.bf16.msra.mxu0 %v2654_v2 }
  0xc7   :  { %2470 = vmatprep.subr.bf16.mxu0 %v2655_v3  ;;  %2501 = vmatpush3.bf16.msra.mxu1 %v2662_v33 }
  0xca   :  { %2471 = vmatpush3.bf16.msra.mxu0 %v2655_v3 }
  0xcb   :  { %2472 = vmatprep.subr.bf16.mxu0 %v2656_v4 }
  0xcc   :  { %1248 = vmatmul.mubr.bf16.gmra.mrb[40].mxu0 %v2025_v26 }
  0xcd   :  { %1345 = vmatmul.mubr.bf16.gmra.mrb[40].mxu1 %v2027_v27  ;;  %1255 = vmatprep.mubr.bf16.mxu0 %v2034_v28 }
  0xce   :  { %1352 = vmatprep.mubr.bf16.mxu1 %v2036_v29  ;;  %2473 = vmatpush3.bf16.msra.mxu0 %v2656_v4 }
  0xcf   :  { %2474 = vmatprep.subr.bf16.mxu0 %v2657_v5 }
  0xd2   :  { %2475 = vmatpush3.bf16.msra.mxu0 %v2657_v5 }
  0xd3   :  { %2476 = vmatprep.subr.bf16.mxu0 %v2658_v6 }
  0xd4   :  { %1256 = vmatmul.mubr.bf16.gmra.mrb[44].mxu0 %v2033_v34 }
  0xd5   :  { %1353 = vmatmul.mubr.bf16.gmra.mrb[44].mxu1 %v2035_v35  ;;  %1263 = vmatprep.mubr.bf16.mxu0 %v2042_v36 }
  0xd6   :  { %1360 = vmatprep.mubr.bf16.mxu1 %v2044_v37  ;;  %2477 = vmatpush3.bf16.msra.mxu0 %v2658_v6 }
  0xd7   :  { %2478 = vmatprep.subr.bf16.mxu0 %v2659_v7 }
  0xda   :  { %2479 = vmatpush3.bf16.msra.mxu0 %v2659_v7 }
  0xdc   :  { %1264 = vmatmul.mubr.bf16.gmra.mrb[48].mxu0 %v2041_v42 }
  0xdd   :  { %1361 = vmatmul.mubr.bf16.gmra.mrb[48].mxu1 %v2043_v43  ;;  %1271 = vmatprep.mubr.bf16.mxu0 %v2050_v44  ;;  %v2663_v43 = vld [vmem:[#allocation8 + $0x18] sm:$0xff]  }
  0xde   :  { %1368 = vmatprep.mubr.bf16.mxu1 %v2052_v45  ;;  %2502 = vmatprep.subr.bf16.mxu1 %v2663_v43 }
  0xdf   :  { %2503 = vmatpush3.bf16.msra.mxu1 %v2663_v43 }
  0xe4   :  { %1272 = vmatmul.mubr.bf16.gmra.mrb[52].mxu0 %v2049_v50 }
  0xe5   :  { %1369 = vmatmul.mubr.bf16.gmra.mrb[52].mxu1 %v2051_v51  ;;  %1279 = vmatprep.mubr.bf16.mxu0 %v2058_v52  ;;  %v2664_v51 = vld [vmem:[#allocation8 + $0x20] sm:$0xff]  }
  0xe6   :  { %1376 = vmatprep.mubr.bf16.mxu1 %v2060_v53  ;;  %2504 = vmatprep.subr.bf16.mxu1 %v2664_v51 }
  0xe7   :  { %2505 = vmatpush3.bf16.msra.mxu1 %v2664_v51 }
  0xec   :  { %1280 = vmatmul.mubr.bf16.gmra.mrb[56].mxu0 %v2057_v58 }
  0xed   :  { %1377 = vmatmul.mubr.bf16.gmra.mrb[56].mxu1 %v2059_v59  ;;  %1287 = vmatprep.mubr.bf16.mxu0 %v2066_v60 }
  0xee   :  { %1384 = vmatprep.mubr.bf16.mxu1 %v2068_v61  ;;  %v2665_v61 = vld [vmem:[#allocation8 + $0x28] sm:$0xff]  }
  0xef   :  { %2506 = vmatprep.subr.bf16.mxu1 %v2665_v61 }
  0xf0   :  { %2507 = vmatpush3.bf16.msra.mxu1 %v2665_v61 }
  0xf4   :  { %1288 = vmatmul.mubr.bf16.gmra.mrb[60].mxu0 %v2065_v62 }
  0xf5   :  { %1385 = vmatmul.mubr.bf16.gmra.mrb[60].mxu1 %v2067_v63 }
 0x14f   :  { %v2176_v8 = vpop.f32.mrb[0].mxu0 }
 0x150   :  { %v2240_v9 = vpop.f32.mrb[0].mxu1  ;;  %v2177_v11 = vpop.f32.mrb[1].mxu0 }
 0x151   :  { %v2178_v12 = vadd.f32 %v2177_v11, %v2176_v8  ;;  %v2241_v13 = vpop.f32.mrb[1].mxu1  ;;  %v2179_v14 = vpop.f32.mrb[2].mxu0 }
 0x152   :  { %v2242_v15 = vadd.f32 %v2241_v13, %v2240_v9  ;;  %v2243_v16 = vpop.f32.mrb[2].mxu1  ;;  %v2180_v17 = vpop.f32.mrb[3].mxu0 }
 0x153   :  { %v1040_v18 = vadd.f32 %v2178_v12, %v2953_v10  ;;  %v2181_v19 = vadd.f32 %v2180_v17, %v2179_v14  ;;  %v2244_v20 = vpop.f32.mrb[3].mxu1 }
 0x154   :  { %v2245_v21 = vadd.f32 %v2244_v20, %v2243_v16 }
 0x155   :  { %v2956_v22 = vadd.f32 %v2242_v15, %v1040_v18  ;;  %v1043_v23 = vadd.f32 %v2181_v19, %v2953_v10 }
 0x157   :  { %v2959_v26 = vadd.f32 %v2245_v21, %v1043_v23  ;;  %v2182_v27 = vpop.f32.mrb[4].mxu0 }
 0x158   :  { %v2246_v28 = vpop.f32.mrb[4].mxu1  ;;  %v2183_v29 = vpop.f32.mrb[5].mxu0 }
 0x159   :  { %v2184_v30 = vadd.f32 %v2183_v29, %v2182_v27  ;;  %v2247_v31 = vpop.f32.mrb[5].mxu1  ;;  %v2185_v32 = vpop.f32.mrb[6].mxu0 }
 0x15a   :  { %v2248_v34 = vadd.f32 %v2247_v31, %v2246_v28  ;;  %v2249_v35 = vpop.f32.mrb[6].mxu1  ;;  %v2186_v36 = vpop.f32.mrb[7].mxu0 }
 0x15b   :  { %v1048_v37 = vadd.f32 %v2184_v30, %v2953_v10  ;;  %v2187_v38 = vadd.f32 %v2186_v36, %v2185_v32  ;;  %v2250_v39 = vpop.f32.mrb[7].mxu1 }
 0x15c   :  { %v2251_v40 = vadd.f32 %v2250_v39, %v2249_v35 }
 0x15d   :  { %v2962_v41 = vadd.f32 %v2248_v34, %v1048_v37  ;;  %v1051_v42 = vadd.f32 %v2187_v38, %v2953_v10 }
 0x15f   :  { %v2965_v44 = vadd.f32 %v2251_v40, %v1051_v42  ;;  %v2188_v45 = vpop.f32.mrb[8].mxu0 }
 0x160   :  { %v2252_v46 = vpop.f32.mrb[8].mxu1  ;;  %v2189_v47 = vpop.f32.mrb[9].mxu0 }
 0x161   :  { %v2190_v48 = vadd.f32 %v2189_v47, %v2188_v45  ;;  %v2253_v49 = vpop.f32.mrb[9].mxu1  ;;  %v2191_v50 = vpop.f32.mrb[10].mxu0 }
 0x162   :  { %v2254_v52 = vadd.f32 %v2253_v49, %v2252_v46  ;;  %v2255_v53 = vpop.f32.mrb[10].mxu1  ;;  %v2192_v54 = vpop.f32.mrb[11].mxu0 }
 0x163   :  { %v1056_v55 = vadd.f32 %v2190_v48, %v2953_v10  ;;  %v2193_v56 = vadd.f32 %v2192_v54, %v2191_v50  ;;  %v2256_v57 = vpop.f32.mrb[11].mxu1 }
 0x164   :  { %v2257_v58 = vadd.f32 %v2256_v57, %v2255_v53 }
 0x165   :  { %v2968_v59 = vadd.f32 %v2254_v52, %v1056_v55  ;;  %v1059_v60 = vadd.f32 %v2193_v56, %v2953_v10 }
 0x167   :  { %v2971_v62 = vadd.f32 %v2257_v58, %v1059_v60  ;;  %v2194_v63 = vpop.f32.mrb[12].mxu0 }
 0x168   :  { %v2258_v0 = vpop.f32.mrb[12].mxu1  ;;  %v2195_v1 = vpop.f32.mrb[13].mxu0 }
 0x169   :  { %v2196_v2 = vadd.f32 %v2195_v1, %v2194_v63  ;;  %v2259_v3 = vpop.f32.mrb[13].mxu1  ;;  %v2197_v4 = vpop.f32.mrb[14].mxu0 }
 0x16a   :  { %v2260_v5 = vadd.f32 %v2259_v3, %v2258_v0  ;;  %v2261_v6 = vpop.f32.mrb[14].mxu1  ;;  %v2198_v7 = vpop.f32.mrb[15].mxu0 }
 0x16b   :  { %v1064_v8 = vadd.f32 %v2196_v2, %v2953_v10  ;;  %v2199_v9 = vadd.f32 %v2198_v7, %v2197_v4  ;;  %v2262_v11 = vpop.f32.mrb[15].mxu1 }
 0x16c   :  { %v2263_v12 = vadd.f32 %v2262_v11, %v2261_v6 }
 0x16d   :  { %v2974_v13 = vadd.f32 %v2260_v5, %v1064_v8  ;;  %v1067_v14 = vadd.f32 %v2199_v9, %v2953_v10 }
 0x16f   :  { %v2977_v15 = vadd.f32 %v2263_v12, %v1067_v14  ;;  %v2200_v16 = vpop.f32.mrb[16].mxu0 }
 0x170   :  { %v2264_v17 = vpop.f32.mrb[16].mxu1  ;;  %v2201_v18 = vpop.f32.mrb[17].mxu0 }
 0x171   :  { %v2202_v19 = vadd.f32 %v2201_v18, %v2200_v16  ;;  %v2265_v20 = vpop.f32.mrb[17].mxu1  ;;  %v2203_v21 = vpop.f32.mrb[18].mxu0 }
 0x172   :  { %v2266_v23 = vadd.f32 %v2265_v20, %v2264_v17  ;;  %v2267_v24 = vpop.f32.mrb[18].mxu1  ;;  %v2204_v25 = vpop.f32.mrb[19].mxu0 }
 0x173   :  { %v1072_v27 = vadd.f32 %v2202_v19, %v2953_v10  ;;  %v2205_v28 = vadd.f32 %v2204_v25, %v2203_v21  ;;  %v2268_v29 = vpop.f32.mrb[19].mxu1 }
 0x174   :  { %v2269_v30 = vadd.f32 %v2268_v29, %v2267_v24 }
 0x175   :  { %v2980_v31 = vadd.f32 %v2266_v23, %v1072_v27  ;;  %v1075_v32 = vadd.f32 %v2205_v28, %v2953_v10 }
 0x177   :  { %v2983_v33 = vadd.f32 %v2269_v30, %v1075_v32  ;;  %v2206_v34 = vpop.f32.mrb[20].mxu0 }
 0x178   :  { %v2270_v35 = vpop.f32.mrb[20].mxu1  ;;  %v2207_v36 = vpop.f32.mrb[21].mxu0 }
 0x179   :  { %v2208_v37 = vadd.f32 %v2207_v36, %v2206_v34  ;;  %v2271_v38 = vpop.f32.mrb[21].mxu1  ;;  %v2209_v39 = vpop.f32.mrb[22].mxu0 }
 0x17a   :  { %v2272_v40 = vadd.f32 %v2271_v38, %v2270_v35  ;;  %v2273_v42 = vpop.f32.mrb[22].mxu1  ;;  %v2210_v43 = vpop.f32.mrb[23].mxu0 }
 0x17b   :  { %v1080_v45 = vadd.f32 %v2208_v37, %v2953_v10  ;;  %v2211_v46 = vadd.f32 %v2210_v43, %v2209_v39  ;;  %v2274_v47 = vpop.f32.mrb[23].mxu1 }
 0x17c   :  { %v2275_v48 = vadd.f32 %v2274_v47, %v2273_v42 }
 0x17d   :  { %v2986_v49 = vadd.f32 %v2272_v40, %v1080_v45  ;;  %v1083_v50 = vadd.f32 %v2211_v46, %v2953_v10 }
 0x17f   :  { %v2989_v51 = vadd.f32 %v2275_v48, %v1083_v50  ;;  %v2212_v52 = vpop.f32.mrb[24].mxu0 }
 0x180   :  { %v2276_v53 = vpop.f32.mrb[24].mxu1  ;;  %v2213_v54 = vpop.f32.mrb[25].mxu0 }
 0x181   :  { %v2214_v55 = vadd.f32 %v2213_v54, %v2212_v52  ;;  %v2277_v56 = vpop.f32.mrb[25].mxu1  ;;  %v2215_v57 = vpop.f32.mrb[26].mxu0 }
 0x182   :  { %v2278_v58 = vadd.f32 %v2277_v56, %v2276_v53  ;;  %v2279_v60 = vpop.f32.mrb[26].mxu1  ;;  %v2216_v61 = vpop.f32.mrb[27].mxu0 }
 0x183   :  { %v1088_v63 = vadd.f32 %v2214_v55, %v2953_v10  ;;  %v2217_v0 = vadd.f32 %v2216_v61, %v2215_v57  ;;  %v2280_v1 = vpop.f32.mrb[27].mxu1 }
 0x184   :  { %v2281_v2 = vadd.f32 %v2280_v1, %v2279_v60 }
 0x185   :  { %v2992_v3 = vadd.f32 %v2278_v58, %v1088_v63  ;;  %v1091_v4 = vadd.f32 %v2217_v0, %v2953_v10 }
 0x187   :  { %v2995_v5 = vadd.f32 %v2281_v2, %v1091_v4  ;;  %v2218_v6 = vpop.f32.mrb[28].mxu0 }
 0x188   :  { %v2282_v7 = vpop.f32.mrb[28].mxu1  ;;  %v2219_v8 = vpop.f32.mrb[29].mxu0 }
 0x189   :  { %v2220_v9 = vadd.f32 %v2219_v8, %v2218_v6  ;;  %v2283_v11 = vpop.f32.mrb[29].mxu1  ;;  %v2221_v12 = vpop.f32.mrb[30].mxu0 }
 0x18a   :  { %v2284_v14 = vadd.f32 %v2283_v11, %v2282_v7  ;;  %v2285_v16 = vpop.f32.mrb[30].mxu1  ;;  %v2222_v17 = vpop.f32.mrb[31].mxu0 }
 0x18b   :  { %v1096_v18 = vadd.f32 %v2220_v9, %v2953_v10  ;;  %v2223_v19 = vadd.f32 %v2222_v17, %v2221_v12  ;;  %v2286_v20 = vpop.f32.mrb[31].mxu1 }
 0x18c   :  { %v2287_v21 = vadd.f32 %v2286_v20, %v2285_v16 }
 0x18d   :  { %v2998_v23 = vadd.f32 %v2284_v14, %v1096_v18  ;;  %v1099_v24 = vadd.f32 %v2223_v19, %v2953_v10 }
 0x18f   :  { %v3001_v25 = vadd.f32 %v2287_v21, %v1099_v24  ;;  %v2304_v27 = vpop.f32.mrb[32].mxu0 }
 0x190   :  { %v2368_v28 = vpop.f32.mrb[32].mxu1  ;;  %v2305_v29 = vpop.f32.mrb[33].mxu0 }
 0x191   :  { %v2306_v30 = vadd.f32 %v2305_v29, %v2304_v27  ;;  %v2369_v32 = vpop.f32.mrb[33].mxu1  ;;  %v2307_v34 = vpop.f32.mrb[34].mxu0 }
 0x192   :  { %v2370_v35 = vadd.f32 %v2369_v32, %v2368_v28  ;;  %v2371_v36 = vpop.f32.mrb[34].mxu1  ;;  %v2308_v37 = vpop.f32.mrb[35].mxu0 }
 0x193   :  { %v1234_v38 = vadd.f32 %v2306_v30, %v2956_v22  ;;  %v2309_v39 = vadd.f32 %v2308_v37, %v2307_v34  ;;  %v2372_v40 = vpop.f32.mrb[35].mxu1 }
 0x194   :  { %v2373_v42 = vadd.f32 %v2372_v40, %v2371_v36 }
 0x195   :  { %v1331_v43 = vadd.f32 %v2370_v35, %v1234_v38  ;;  %v1237_v45 = vadd.f32 %v2309_v39, %v2959_v26 }
 0x197   :  { %v1334_v10 = vadd.f32 %v2373_v42, %v1237_v45  ;;  %v2310_v46 = vpop.f32.mrb[36].mxu0  ;;  %v1393_v50 = vmax.f32 %v1331_v43, 0.0 }
 0x198   :  { %v2374_v47 = vpop.f32.mrb[36].mxu1  ;;  %v2311_v48 = vpop.f32.mrb[37].mxu0 }
 0x199   :  { %v1394_v52 = vmax.f32 %v1334_v10, 0.0  ;;  %v2312_v53 = vadd.f32 %v2311_v48, %v2310_v46  ;;  %v2375_v54 = vpop.f32.mrb[37].mxu1  ;;  %v2313_v55 = vpop.f32.mrb[38].mxu0 }
 0x19a   :  { %v2376_v56 = vadd.f32 %v2375_v54, %v2374_v47  ;;  %v2377_v57 = vpop.f32.mrb[38].mxu1  ;;  %v2314_v58 = vpop.f32.mrb[39].mxu0 }
 0x19b   :  { %v1242_v22 = vadd.f32 %v2312_v53, %v2962_v41  ;;  %v2315_v60 = vadd.f32 %v2314_v58, %v2313_v55  ;;  %v2378_v61 = vpop.f32.mrb[39].mxu1  ;;  %v1409_v63 = vpack.c.bf16 %v1394_v52, %v1393_v50 }
 0x19c   :  { %v2379_v0 = vadd.f32 %v2378_v61, %v2377_v57 }
 0x19d   :  { %v1339_v1 = vadd.f32 %v2376_v56, %v1242_v22  ;;  %v1245_v26 = vadd.f32 %v2315_v60, %v2965_v44  ;;  %2480 = vmatprep.mubr.bf16.mxu0 %v1409_v63 }
 0x19f   :  { %v1342_v2 = vadd.f32 %v2379_v0, %v1245_v26  ;;  %v2316_v4 = vpop.f32.mrb[40].mxu0  ;;  %v1395_v8 = vmax.f32 %v1339_v1, 0.0 }
 0x1a0   :  { %v2380_v6 = vpop.f32.mrb[40].mxu1  ;;  %v2317_v7 = vpop.f32.mrb[41].mxu0 }
 0x1a1   :  { %v1396_v9 = vmax.f32 %v1342_v2, 0.0  ;;  %v2318_v11 = vadd.f32 %v2317_v7, %v2316_v4  ;;  %v2381_v12 = vpop.f32.mrb[41].mxu1  ;;  %v2319_v14 = vpop.f32.mrb[42].mxu0 }
 0x1a2   :  { %v2382_v16 = vadd.f32 %v2381_v12, %v2380_v6  ;;  %v2383_v17 = vpop.f32.mrb[42].mxu1  ;;  %v2320_v41 = vpop.f32.mrb[43].mxu0 }
 0x1a3   :  { %v1410_v18 = vpack.c.bf16 %v1396_v9, %v1395_v8  ;;  %v1250_v19 = vadd.f32 %v2318_v11, %v2968_v59  ;;  %v2321_v20 = vadd.f32 %v2320_v41, %v2319_v14  ;;  %v2384_v21 = vpop.f32.mrb[43].mxu1 }
 0x1a4   :  { %v2385_v24 = vadd.f32 %v2384_v21, %v2383_v17 }
 0x1a5   :  { %v1347_v44 = vadd.f32 %v2382_v16, %v1250_v19  ;;  %v1253_v27 = vadd.f32 %v2321_v20, %v2971_v62  ;;  %2481 = vmatmul.mubr.bf16.vlgmr.msra.gmra.mrb[64].mxu0 %v1410_v18 }
 0x1a7   :  { %v1350_v28 = vadd.f32 %v2385_v24, %v1253_v27  ;;  %v2322_v29 = vpop.f32.mrb[44].mxu0  ;;  %v1397_v34 = vmax.f32 %v1347_v44, 0.0 }
 0x1a8   :  { %v2386_v30 = vpop.f32.mrb[44].mxu1  ;;  %v2323_v32 = vpop.f32.mrb[45].mxu0 }
 0x1a9   :  { %v1398_v35 = vmax.f32 %v1350_v28, 0.0  ;;  %v2324_v36 = vadd.f32 %v2323_v32, %v2322_v29  ;;  %v2387_v37 = vpop.f32.mrb[45].mxu1  ;;  %v2325_v38 = vpop.f32.mrb[46].mxu0 }
 0x1aa   :  { %v2388_v39 = vadd.f32 %v2387_v37, %v2386_v30  ;;  %v2389_v40 = vpop.f32.mrb[46].mxu1  ;;  %v2326_v42 = vpop.f32.mrb[47].mxu0 }
 0x1ab   :  { %v1258_v59 = vadd.f32 %v2324_v36, %v2974_v13  ;;  %v2327_v43 = vadd.f32 %v2326_v42, %v2325_v38  ;;  %v2390_v45 = vpop.f32.mrb[47].mxu1  ;;  %v1411_v10 = vpack.c.bf16 %v1398_v35, %v1397_v34 }
 0x1ac   :  { %v2391_v46 = vadd.f32 %v2390_v45, %v2389_v40 }
 0x1ad   :  { %v1355_v62 = vadd.f32 %v2388_v39, %v1258_v59  ;;  %v1261_v47 = vadd.f32 %v2327_v43, %v2977_v15  ;;  %2484 = vmatprep.mubr.bf16.mxu0 %v1411_v10 }
 0x1af   :  { %v1358_v48 = vadd.f32 %v2391_v46, %v1261_v47  ;;  %v2328_v50 = vpop.f32.mrb[48].mxu0  ;;  %v1399_v54 = vmax.f32 %v1355_v62, 0.0 }
 0x1b0   :  { %v2392_v52 = vpop.f32.mrb[48].mxu1  ;;  %v2329_v53 = vpop.f32.mrb[49].mxu0 }
 0x1b1   :  { %v1400_v55 = vmax.f32 %v1358_v48, 0.0  ;;  %v2330_v56 = vadd.f32 %v2329_v53, %v2328_v50  ;;  %v2393_v57 = vpop.f32.mrb[49].mxu1  ;;  %v2331_v58 = vpop.f32.mrb[50].mxu0 }
 0x1b2   :  { %v2394_v22 = vadd.f32 %v2393_v57, %v2392_v52  ;;  %v2395_v60 = vpop.f32.mrb[50].mxu1  ;;  %v2332_v13 = vpop.f32.mrb[51].mxu0 }
 0x1b3   :  { %v1266_v61 = vadd.f32 %v2330_v56, %v2980_v31  ;;  %v2333_v63 = vadd.f32 %v2332_v13, %v2331_v58  ;;  %v2396_v0 = vpop.f32.mrb[51].mxu1  ;;  %v1412_v1 = vpack.c.bf16 %v1400_v55, %v1399_v54 }
 0x1b4   :  { %v2397_v26 = vadd.f32 %v2396_v0, %v2395_v60 }
 0x1b5   :  { %v1363_v15 = vadd.f32 %v2394_v22, %v1266_v61  ;;  %v1269_v2 = vadd.f32 %v2333_v63, %v2983_v33  ;;  %2485 = vmatmul.mubr.bf16.gmra.mrb[68].mxu0 %v1412_v1 }
 0x1b7   :  { %v1366_v4 = vadd.f32 %v2397_v26, %v1269_v2  ;;  %v2334_v6 = vpop.f32.mrb[52].mxu0  ;;  %v1401_v9 = vmax.f32 %v1363_v15, 0.0  ;;  %v2666_v2 = vld [vmem:[#allocation8 + $0x30] sm:$0xff]  }
 0x1b8   :  { %v2398_v7 = vpop.f32.mrb[52].mxu1  ;;  %v2335_v8 = vpop.f32.mrb[53].mxu0  ;;  %2508 = vmatprep.subr.bf16.mxu1 %v2666_v2 }
 0x1b9   :  { %v1402_v11 = vmax.f32 %v1366_v4, 0.0  ;;  %v2336_v12 = vadd.f32 %v2335_v8, %v2334_v6  ;;  %v2399_v14 = vpop.f32.mrb[53].mxu1  ;;  %v2337_v16 = vpop.f32.mrb[54].mxu0  ;;  %2509 = vmatpush3.bf16.msra.mxu1 %v2666_v2  ;;  %v2667_v4 = vld [vmem:[#allocation8 + $0x38] sm:$0xff]   ;;  %v2669_v6 = vld [vmem:[#allocation10 + $0x8] sm:$0xff]   ;;  %v2672_v8 = vld [vmem:[#allocation10 + $0x20] sm:$0xff]  }
 0x1ba   :  { %v2400_v17 = vadd.f32 %v2399_v14, %v2398_v7  ;;  %v2401_v41 = vpop.f32.mrb[54].mxu1  ;;  %v2338_v31 = vpop.f32.mrb[55].mxu0  ;;  %2510 = vmatprep.subr.bf16.mxu1 %v2667_v4  ;;  %v2670_v7 = vld [vmem:[#allocation10 + $0x10] sm:$0xff]  }
 0x1bb   :  { %v1274_v18 = vadd.f32 %v2336_v12, %v2986_v49  ;;  %v2339_v19 = vadd.f32 %v2338_v31, %v2337_v16  ;;  %v2402_v20 = vpop.f32.mrb[55].mxu1  ;;  %v1413_v21 = vpack.c.bf16 %v1402_v11, %v1401_v9  ;;  %v2673_v9 = vld [vmem:[#allocation10 + $0x28] sm:$0xff]   ;;  %v3022_v11 = vld [vmem:[%s3062_s4] ss:$0 sm:$0xff] }
 0x1bc   :  { %v2403_v24 = vadd.f32 %v2402_v20, %v2401_v41 }
 0x1bd   :  { %v1371_v33 = vadd.f32 %v2400_v17, %v1274_v18  ;;  %v1277_v44 = vadd.f32 %v2339_v19, %v2989_v51  ;;  %2488 = vmatprep.mubr.bf16.mxu0 %v1413_v21  ;;  %2511 = vmatpush3.bf16.msra.mxu1 %v2667_v4  ;;  %v2674_v4 = vld [vmem:[#allocation10 + $0x30] sm:$0xff]  }
 0x1bf   :  { %v1374_v27 = vadd.f32 %v2403_v24, %v1277_v44  ;;  %v2340_v28 = vpop.f32.mrb[56].mxu0  ;;  %v1403_v32 = vmax.f32 %v1371_v33, 0.0 }
 0x1c0   :  { %v2404_v29 = vpop.f32.mrb[56].mxu1  ;;  %v2341_v30 = vpop.f32.mrb[57].mxu0 }
 0x1c1   :  { %v1404_v34 = vmax.f32 %v1374_v27, 0.0  ;;  %v2342_v35 = vadd.f32 %v2341_v30, %v2340_v28  ;;  %v2405_v36 = vpop.f32.mrb[57].mxu1  ;;  %v2343_v37 = vpop.f32.mrb[58].mxu0 }
 0x1c2   :  { %v2406_v38 = vadd.f32 %v2405_v36, %v2404_v29  ;;  %v2407_v39 = vpop.f32.mrb[58].mxu1  ;;  %v2344_v49 = vpop.f32.mrb[59].mxu0 }
 0x1c3   :  { %v1282_v40 = vadd.f32 %v2342_v35, %v2992_v3  ;;  %v2345_v42 = vadd.f32 %v2344_v49, %v2343_v37  ;;  %v2408_v59 = vpop.f32.mrb[59].mxu1  ;;  %v1414_v43 = vpack.c.bf16 %v1404_v34, %v1403_v32 }
 0x1c4   :  { %v2409_v45 = vadd.f32 %v2408_v59, %v2407_v39 }
 0x1c5   :  { %v1379_v51 = vadd.f32 %v2406_v38, %v1282_v40  ;;  %v1285_v10 = vadd.f32 %v2345_v42, %v2995_v5  ;;  %2489 = vmatmul.mubr.bf16.gmra.mrb[72].mxu0 %v1414_v43 }
 0x1c7   :  { %v1382_v46 = vadd.f32 %v2409_v45, %v1285_v10  ;;  %v2346_v62 = vpop.f32.mrb[60].mxu0  ;;  %v1405_v50 = vmax.f32 %v1379_v51, 0.0 }
 0x1c8   :  { %v2410_v47 = vpop.f32.mrb[60].mxu1  ;;  %v2347_v48 = vpop.f32.mrb[61].mxu0 }
 0x1c9   :  { %v1406_v52 = vmax.f32 %v1382_v46, 0.0  ;;  %v2348_v53 = vadd.f32 %v2347_v48, %v2346_v62  ;;  %v2411_v54 = vpop.f32.mrb[61].mxu1  ;;  %v2349_v55 = vpop.f32.mrb[62].mxu0 }
 0x1ca   :  { %v2412_v56 = vadd.f32 %v2411_v54, %v2410_v47  ;;  %v2413_v57 = vpop.f32.mrb[62].mxu1  ;;  %v2350_v3 = vpop.f32.mrb[63].mxu0 }
 0x1cb   :  { %v1290_v58 = vadd.f32 %v2348_v53, %v2998_v23  ;;  %v2351_v22 = vadd.f32 %v2350_v3, %v2349_v55  ;;  %v2414_v60 = vpop.f32.mrb[63].mxu1  ;;  %v1415_v13 = vpack.c.bf16 %v1406_v52, %v1405_v50  ;;  %v2668_v23 = vld [vmem:[#allocation10] sm:$0xff]  }
 0x1cc   :  { %v2415_v61 = vadd.f32 %v2414_v60, %v2413_v57  ;;  %2528 = vmatprep.subr.bf16.mxu0 %v2668_v23  ;;  %2560 = vmatprep.subr.bf16.mxu1 %v2668_v23 }
 0x1cd   :  { %v1387_v5 = vadd.f32 %v2412_v56, %v1290_v58  ;;  %v1293_v63 = vadd.f32 %v2351_v22, %v3001_v25  ;;  %2492 = vmatprep.mubr.bf16.mxu0 %v1415_v13  ;;  %2529 = vmatpush3.bf16.msra.mxu0 %v2668_v23  ;;  %v2671_v25 = vld [vmem:[#allocation10 + $0x18] sm:$0xff]  }
 0x1ce   :  { %2530 = vmatprep.subr.bf16.mxu0 %v2669_v6 }
 0x1cf   :  { %v1390_v0 = vadd.f32 %v2415_v61, %v1293_v63  ;;  %v1407_v1 = vmax.f32 %v1387_v5, 0.0 }
 0x1d1   :  { %v1408_v26 = vmax.f32 %v1390_v0, 0.0  ;;  %2531 = vmatpush3.bf16.msra.mxu0 %v2669_v6 }
 0x1d2   :  { %2532 = vmatprep.subr.bf16.mxu0 %v2670_v7 }
 0x1d3   :  { %v1416_v15 = vpack.c.bf16 %v1408_v26, %v1407_v1 }
 0x1d5   :  { %2493 = vmatmul.mubr.bf16.gmra.mrb[76].mxu0 %v1416_v15 }
 0x1d6   :  { %2533 = vmatpush3.bf16.msra.mxu0 %v2670_v7 }
 0x1d7   :  { %2534 = vmatprep.subr.bf16.mxu0 %v2671_v25 }
 0x1da   :  { %2535 = vmatpush3.bf16.msra.mxu0 %v2671_v25 }
 0x1db   :  { %2536 = vmatprep.subr.bf16.mxu0 %v2672_v8 }
 0x1de   :  { %2537 = vmatpush3.bf16.msra.mxu0 %v2672_v8 }
 0x1df   :  { %2538 = vmatprep.subr.bf16.mxu0 %v2673_v9 }
 0x1e2   :  { %2539 = vmatpush3.bf16.msra.mxu0 %v2673_v9 }
 0x1e3   :  { %2540 = vmatprep.subr.bf16.mxu0 %v2674_v4 }
 0x1e6   :  { %2541 = vmatpush3.bf16.msra.mxu0 %v2674_v4 }
 0x278   :  { %v2482_v12 = vpop.f32.mrb[64].mxu0 }
 0x279   :  { %v1531_v14 = vadd.f32 %v2482_v12, %v3022_v11  ;;  %v1522_v16 = vpop.f32.mrb[65].mxu0 }
 0x27a   :  { %v1523_v17 = vadd.f32 %v3022_v11, %v1522_v16  ;;  %v2483_v41 = vpop.f32.mrb[66].mxu0 }
 0x27b   :  { %v1534_v31 = vadd.f32 %v2483_v41, %v3022_v11  ;;  %v1525_v18 = vpop.f32.mrb[67].mxu0  ;;  %v1587_v20 = vmax.f32 %v1531_v14, 0.0 }
 0x27c   :  { %v1526_v19 = vadd.f32 %v3022_v11, %v1525_v18  ;;  %v1585_v24 = vmax.f32 %v1523_v17, 0.0 }
 0x27d   :  { %v1588_v21 = vmax.f32 %v1534_v31, 0.0 }
 0x27e   :  { %v1586_v33 = vmax.f32 %v1526_v19, 0.0 }
 0x27f   :  { %v1602_v44 = vpack.c.bf16 %v1588_v21, %v1587_v20 }
 0x280   :  { %v1601_v27 = vpack.c.bf16 %v1586_v33, %v1585_v24 }
 0x282   :  { %2512 = vmatprep.mubr.bf16.mxu1 %v1601_v27 }
 0x283   :  { %2513 = vmatmul.mubr.bf16.vlgmr.msra.gmra.mrb[64].mxu1 %v1602_v44 }
 0x284   :  { %2568 = vmatpush3.bf16.msra.mxu1 %v2668_v23  ;;  %v2675_v23 = vld [vmem:[#allocation10 + $0x38] sm:$0xff]  }
 0x285   :  { %2561 = vmatprep.subr.bf16.mxu1 %v2669_v6  ;;  %2542 = vmatprep.subr.bf16.mxu0 %v2675_v23 }
 0x286   :  { %2543 = vmatpush3.bf16.msra.mxu0 %v2675_v23 }
 0x288   :  { %v2486_v28 = vpop.f32.mrb[68].mxu0  ;;  %2569 = vmatpush3.bf16.msra.mxu1 %v2669_v6  ;;  %v2142_v6 = vld [vmem:[%s3064_s6] ss:$0 sm:$0xff] }
 0x289   :  { %v1547_v29 = vadd.f32 %v2486_v28, %v3022_v11  ;;  %v1538_v30 = vpop.f32.mrb[69].mxu0  ;;  %2562 = vmatprep.subr.bf16.mxu1 %v2670_v7 }
 0x28a   :  { %v1539_v32 = vadd.f32 %v3022_v11, %v1538_v30  ;;  %v2487_v34 = vpop.f32.mrb[70].mxu0 }
 0x28b   :  { %v1550_v35 = vadd.f32 %v2487_v34, %v3022_v11  ;;  %v1541_v36 = vpop.f32.mrb[71].mxu0  ;;  %v1591_v38 = vmax.f32 %v1547_v29, 0.0 }
 0x28c   :  { %v1542_v37 = vadd.f32 %v3022_v11, %v1541_v36  ;;  %2570 = vmatpush3.bf16.msra.mxu1 %v2670_v7  ;;  %v1589_v49 = vmax.f32 %v1539_v32, 0.0 }
 0x28d   :  { %v1592_v39 = vmax.f32 %v1550_v35, 0.0  ;;  %2563 = vmatprep.subr.bf16.mxu1 %v2671_v25 }
 0x28e   :  { %v1590_v40 = vmax.f32 %v1542_v37, 0.0 }
 0x28f   :  { %v1604_v42 = vpack.c.bf16 %v1592_v39, %v1591_v38 }
 0x290   :  { %v1603_v59 = vpack.c.bf16 %v1590_v40, %v1589_v49  ;;  %2571 = vmatpush3.bf16.msra.mxu1 %v2671_v25 }
 0x291   :  { %2564 = vmatprep.subr.bf16.mxu1 %v2672_v8 }
 0x292   :  { %2516 = vmatprep.mubr.bf16.mxu1 %v1603_v59 }
 0x293   :  { %2517 = vmatmul.mubr.bf16.gmra.mrb[68].mxu1 %v1604_v42 }
 0x294   :  { %2572 = vmatpush3.bf16.msra.mxu1 %v2672_v8 }
 0x295   :  { %2565 = vmatprep.subr.bf16.mxu1 %v2673_v9 }
 0x298   :  { %v2490_v43 = vpop.f32.mrb[72].mxu0  ;;  %2573 = vmatpush3.bf16.msra.mxu1 %v2673_v9 }
 0x299   :  { %v1563_v45 = vadd.f32 %v2490_v43, %v3022_v11  ;;  %v1554_v51 = vpop.f32.mrb[73].mxu0  ;;  %2566 = vmatprep.subr.bf16.mxu1 %v2674_v4 }
 0x29a   :  { %v1555_v10 = vadd.f32 %v3022_v11, %v1554_v51  ;;  %v2491_v46 = vpop.f32.mrb[74].mxu0 }
 0x29b   :  { %v1566_v62 = vadd.f32 %v2491_v46, %v3022_v11  ;;  %v1557_v47 = vpop.f32.mrb[75].mxu0  ;;  %v1595_v50 = vmax.f32 %v1563_v45, 0.0 }
 0x29c   :  { %v1558_v48 = vadd.f32 %v3022_v11, %v1557_v47  ;;  %v1593_v53 = vmax.f32 %v1555_v10, 0.0  ;;  %2574 = vmatpush3.bf16.msra.mxu1 %v2674_v4 }
 0x29d   :  { %v1596_v52 = vmax.f32 %v1566_v62, 0.0  ;;  %2567 = vmatprep.subr.bf16.mxu1 %v2675_v23 }
 0x29e   :  { %v1594_v54 = vmax.f32 %v1558_v48, 0.0 }
 0x29f   :  { %v1606_v55 = vpack.c.bf16 %v1596_v52, %v1595_v50 }
 0x2a0   :  { %v1605_v56 = vpack.c.bf16 %v1594_v54, %v1593_v53  ;;  %2575 = vmatpush3.bf16.msra.mxu1 %v2675_v23 }
 0x2a2   :  { %2520 = vmatprep.mubr.bf16.mxu1 %v1605_v56 }
 0x2a3   :  { %2521 = vmatmul.mubr.bf16.gmra.mrb[72].mxu1 %v1606_v55 }
 0x2a8   :  { %v2494_v57 = vpop.f32.mrb[76].mxu0 }
 0x2a9   :  { %v1579_v3 = vadd.f32 %v2494_v57, %v3022_v11  ;;  %v1570_v58 = vpop.f32.mrb[77].mxu0 }
 0x2aa   :  { %v1571_v22 = vadd.f32 %v3022_v11, %v1570_v58  ;;  %v2495_v60 = vpop.f32.mrb[78].mxu0 }
 0x2ab   :  { %v1582_v13 = vadd.f32 %v2495_v60, %v3022_v11  ;;  %v1573_v61 = vpop.f32.mrb[79].mxu0  ;;  %v1599_v63 = vmax.f32 %v1579_v3, 0.0 }
 0x2ac   :  { %v1574_v5 = vadd.f32 %v3022_v11, %v1573_v61  ;;  %v1597_v1 = vmax.f32 %v1571_v22, 0.0 }
 0x2ad   :  { %v1600_v0 = vmax.f32 %v1582_v13, 0.0 }
 0x2ae   :  { %v1598_v26 = vmax.f32 %v1574_v5, 0.0 }
 0x2af   :  { %v1608_v15 = vpack.c.bf16 %v1600_v0, %v1599_v63  ;;  %v2151_v0 = vld [vmem:[%s3066_s8] ss:$0 sm:$0xff]  ;;  %s2825_s8 = smov [#allocation11]  }
 0x2b0   :  { %v1607_v2 = vpack.c.bf16 %v1598_v26, %v1597_v1  ;;  %s1990_s12 = sshll.u32 %s2825_s8, 4  ;;  %s1991_s12 = int_to_ptr.vmem [resolvable:$true] %s1990_s12 }
 0x2b1   :  { %s2786_s13 = scalar_lea.vmem %s1991_s12, 2048  ;;  %p2791_p13 = scmp.lt.s32.totalorder %s1991_s12, %s1991_s12 }
 0x2b2   :  { %2524 = vmatprep.mubr.bf16.mxu1 %v1607_v2  ;;  %p2787_p12 = scmp.ne.s32.totalorder %s1991_s12, %s2786_s13  ;;  %p2792_p0 = scmp.lt.s32.totalorder %s2786_s13, %s2786_s13 }
 0x2b3   :  { %2525 = vmatmul.mubr.bf16.gmra.mrb[76].mxu1 %v1608_v15 }
 0x2b4   :  { %p2793_p1 = por %p2792_p0, %p2791_p13 }
 0x2b6   :  { %p2794_p2 = pnand %p2793_p1, %p2787_p12 }
 0x356   :  { %v2514_v7 = vpop.f32.mrb[64].mxu1 }
 0x357   :  { %v1723_v25 = vadd.f32 %v2514_v7, %v2142_v6  ;;  %v1714_v8 = vpop.f32.mrb[65].mxu1 }
 0x358   :  { %v1715_v9 = vadd.f32 %v2142_v6, %v1714_v8  ;;  %v2515_v11 = vpop.f32.mrb[66].mxu1 }
 0x359   :  { %v1726_v12 = vadd.f32 %v2515_v11, %v2142_v6  ;;  %v1717_v14 = vpop.f32.mrb[67].mxu1  ;;  %v1779_v17 = vmax.f32 %v1723_v25, 0.0 }
 0x35a   :  { %v1718_v16 = vadd.f32 %v2142_v6, %v1717_v14  ;;  %v1777_v31 = vmax.f32 %v1715_v9, 0.0 }
 0x35b   :  { %v1780_v41 = vmax.f32 %v1726_v12, 0.0 }
 0x35c   :  { %v1778_v18 = vmax.f32 %v1718_v16, 0.0 }
 0x35d   :  { %v1794_v19 = vpack.c.bf16 %v1780_v41, %v1779_v17 }
 0x35e   :  { %v1793_v20 = vpack.c.bf16 %v1778_v18, %v1777_v31 }
 0x360   :  { %2544 = vmatprep.mubr.bf16.mxu0 %v1793_v20 }
 0x361   :  { %2545 = vmatmul.mubr.bf16.vlgmr.msra.gmra.mrb[80].mxu0 %v1794_v19 }
 0x366   :  { %v2518_v21 = vpop.f32.mrb[68].mxu1 }
 0x367   :  { %v1739_v24 = vadd.f32 %v2518_v21, %v2142_v6  ;;  %v1730_v33 = vpop.f32.mrb[69].mxu1 }
 0x368   :  { %v1731_v44 = vadd.f32 %v2142_v6, %v1730_v33  ;;  %v2519_v27 = vpop.f32.mrb[70].mxu1 }
 0x369   :  { %v1742_v28 = vadd.f32 %v2519_v27, %v2142_v6  ;;  %v1733_v29 = vpop.f32.mrb[71].mxu1  ;;  %v1783_v32 = vmax.f32 %v1739_v24, 0.0 }
 0x36a   :  { %v1734_v30 = vadd.f32 %v2142_v6, %v1733_v29  ;;  %v1781_v35 = vmax.f32 %v1731_v44, 0.0 }
 0x36b   :  { %v1784_v34 = vmax.f32 %v1742_v28, 0.0 }
 0x36c   :  { %v1782_v36 = vmax.f32 %v1734_v30, 0.0 }
 0x36d   :  { %v1796_v37 = vpack.c.bf16 %v1784_v34, %v1783_v32 }
 0x36e   :  { %v1795_v38 = vpack.c.bf16 %v1782_v36, %v1781_v35 }
 0x370   :  { %2548 = vmatprep.mubr.bf16.mxu0 %v1795_v38 }
 0x371   :  { %2549 = vmatmul.mubr.bf16.gmra.mrb[84].mxu0 %v1796_v37 }
 0x376   :  { %v2522_v39 = vpop.f32.mrb[72].mxu1 }
 0x377   :  { %v1755_v49 = vadd.f32 %v2522_v39, %v2142_v6  ;;  %v1746_v40 = vpop.f32.mrb[73].mxu1 }
 0x378   :  { %v1747_v42 = vadd.f32 %v2142_v6, %v1746_v40  ;;  %v2523_v59 = vpop.f32.mrb[74].mxu1 }
 0x379   :  { %v1758_v43 = vadd.f32 %v2523_v59, %v2142_v6  ;;  %v1749_v45 = vpop.f32.mrb[75].mxu1  ;;  %v1787_v10 = vmax.f32 %v1755_v49, 0.0 }
 0x37a   :  { %v1750_v51 = vadd.f32 %v2142_v6, %v1749_v45  ;;  %v1785_v62 = vmax.f32 %v1747_v42, 0.0 }
 0x37b   :  { %v1788_v46 = vmax.f32 %v1758_v43, 0.0 }
 0x37c   :  { %v1786_v47 = vmax.f32 %v1750_v51, 0.0 }
 0x37d   :  { %v1798_v48 = vpack.c.bf16 %v1788_v46, %v1787_v10 }
 0x37e   :  { %v1797_v50 = vpack.c.bf16 %v1786_v47, %v1785_v62 }
 0x380   :  { %2552 = vmatprep.mubr.bf16.mxu1 %v1797_v50 }
 0x381   :  { %2553 = vmatmul.mubr.bf16.vlgmr.msra.gmra.mrb[80].mxu1 %v1798_v48 }
 0x386   :  { %v2526_v52 = vpop.f32.mrb[76].mxu1 }
 0x387   :  { %v1771_v53 = vadd.f32 %v2526_v52, %v2142_v6  ;;  %v1762_v54 = vpop.f32.mrb[77].mxu1 }
 0x388   :  { %v1763_v55 = vadd.f32 %v2142_v6, %v1762_v54  ;;  %v2527_v56 = vpop.f32.mrb[78].mxu1 }
 0x389   :  { %v1774_v57 = vadd.f32 %v2527_v56, %v2142_v6  ;;  %v1765_v3 = vpop.f32.mrb[79].mxu1  ;;  %v1791_v22 = vmax.f32 %v1771_v53, 0.0 }
 0x38a   :  { %v1766_v58 = vadd.f32 %v2142_v6, %v1765_v3  ;;  %v1789_v13 = vmax.f32 %v1763_v55, 0.0 }
 0x38b   :  { %v1792_v60 = vmax.f32 %v1774_v57, 0.0 }
 0x38c   :  { %v1790_v61 = vmax.f32 %v1766_v58, 0.0 }
 0x38d   :  { %v1800_v5 = vpack.c.bf16 %v1792_v60, %v1791_v22 }
 0x38e   :  { %v1799_v63 = vpack.c.bf16 %v1790_v61, %v1789_v13 }
 0x390   :  { %2556 = vmatprep.mubr.bf16.mxu1 %v1799_v63 }
 0x391   :  { %2557 = vmatmul.mubr.bf16.gmra.mrb[84].mxu1 %v1800_v5 }
 0x434   :  { %v2546_v1 = vpop.f32.mrb[80].mxu0 }
 0x435   :  { %v1915_v26 = vadd.f32 %v2546_v1, %v2151_v0  ;;  %v1906_v15 = vpop.f32.mrb[81].mxu0 }
 0x436   :  { %v1907_v2 = vadd.f32 %v2151_v0, %v1906_v15  ;;  %v2547_v4 = vpop.f32.mrb[82].mxu0 }
 0x437   :  { %1971 = vst [vmem:[#allocation11 + $0x10] sm:$0xff] %v1915_v26  ;;  %v1918_v23 = vadd.f32 %v2547_v4, %v2151_v0  ;;  %v1909_v6 = vpop.f32.mrb[83].mxu0 }
 0x438   :  { %1969 = vst [vmem:[#allocation11] sm:$0xff] %v1907_v2  ;;  %v1910_v7 = vadd.f32 %v2151_v0, %v1909_v6 }
 0x439   :  { %1972 = vst [vmem:[#allocation11 + $0x18] sm:$0xff] %v1918_v23 }
 0x43a   :  { %1970 = vst [vmem:[#allocation11 + $0x8] sm:$0xff] %v1910_v7 }
 0x444   :  { %v2550_v25 = vpop.f32.mrb[84].mxu0 }
 0x445   :  { %v1931_v8 = vadd.f32 %v2550_v25, %v2151_v0  ;;  %v1922_v9 = vpop.f32.mrb[85].mxu0 }
 0x446   :  { %v1923_v11 = vadd.f32 %v2151_v0, %v1922_v9  ;;  %v2551_v12 = vpop.f32.mrb[86].mxu0 }
 0x447   :  { %1975 = vst [vmem:[#allocation11 + $0x30] sm:$0xff] %v1931_v8  ;;  %v1934_v14 = vadd.f32 %v2551_v12, %v2151_v0  ;;  %v1925_v16 = vpop.f32.mrb[87].mxu0 }
 0x448   :  { %1973 = vst [vmem:[#allocation11 + $0x20] sm:$0xff] %v1923_v11  ;;  %v1926_v17 = vadd.f32 %v2151_v0, %v1925_v16 }
 0x449   :  { %1976 = vst [vmem:[#allocation11 + $0x38] sm:$0xff] %v1934_v14 }
 0x44a   :  { %1974 = vst [vmem:[#allocation11 + $0x28] sm:$0xff] %v1926_v17 }
 0x454   :  { %v2554_v41 = vpop.f32.mrb[80].mxu1 }
 0x455   :  { %v1947_v31 = vadd.f32 %v2554_v41, %v2151_v0  ;;  %v1938_v18 = vpop.f32.mrb[81].mxu1 }
 0x456   :  { %v1939_v19 = vadd.f32 %v2151_v0, %v1938_v18  ;;  %v2555_v20 = vpop.f32.mrb[82].mxu1 }
 0x457   :  { %1979 = vst [vmem:[#allocation11 + $0x50] sm:$0xff] %v1947_v31  ;;  %v1950_v21 = vadd.f32 %v2555_v20, %v2151_v0  ;;  %v1941_v24 = vpop.f32.mrb[83].mxu1 }
 0x458   :  { %1977 = vst [vmem:[#allocation11 + $0x40] sm:$0xff] %v1939_v19  ;;  %v1942_v33 = vadd.f32 %v2151_v0, %v1941_v24 }
 0x459   :  { %1980 = vst [vmem:[#allocation11 + $0x58] sm:$0xff] %v1950_v21 }
 0x45a   :  { %1978 = vst [vmem:[#allocation11 + $0x48] sm:$0xff] %v1942_v33 }
 0x464   :  { %v2558_v44 = vpop.f32.mrb[84].mxu1 }
 0x465   :  { %v1963_v27 = vadd.f32 %v2558_v44, %v2151_v0  ;;  %v1954_v28 = vpop.f32.mrb[85].mxu1 }
 0x466   :  { %v1955_v29 = vadd.f32 %v2151_v0, %v1954_v28  ;;  %v2559_v30 = vpop.f32.mrb[86].mxu1 }
 0x467   :  { %1983 = vst [vmem:[#allocation11 + $0x70] sm:$0xff] %v1963_v27  ;;  %v1966_v32 = vadd.f32 %v2559_v30, %v2151_v0  ;;  %v1957_v34 = vpop.f32.mrb[87].mxu1 }
 0x468   :  { %1981 = vst [vmem:[#allocation11 + $0x60] sm:$0xff] %v1955_v29  ;;  %v1958_v35 = vadd.f32 %v2151_v0, %v1957_v34 }
 0x469   :  { %1984 = vst [vmem:[#allocation11 + $0x78] sm:$0xff] %v1966_v32 }
 0x46a   :  { %1982 = vst [vmem:[#allocation11 + $0x68] sm:$0xff] %v1958_v35 }
 0x46b   :  { %2797 = shalt.err (!%p2794_p2)
}
 0x46c   :  { %s2798_s14 = scalar_lea.hbm %s3067_s9, 2048 }
 0x46d   :  { %p2799_p3 = scmp.ne.s32.totalorder %s3067_s9, %s2798_s14  ;;  %p2802_p4 = scmp.lt.u32.totalorder %s2798_s14, %s3067_s9 }
 0x46f   :  { %p2804_p5 = pnand %p2802_p4, %p2799_p3 }
 0x471   :  { %2807 = shalt.err (!%p2804_p5)
}
 0x472   :  { %s2826_s26 = smov 128   ;;  %s2827_s18 = smov 8  }
 0x473   :  { %1996 = dma.vmem_to_hbm [thread:$0]  %s1991_s12, 2048, %s3067_s9, [#allocation4], %s2826_s26, %s2826_s26, %s2827_s18  }
 0x474   :  { %2814 = dma.done.wait [#allocation4], 2048  }
 0x475   :  { %2815 = vsyncadd [#allocation4], 4294965248 }
 0x476   :  { %2000 = vsyncpa [#allocation3], 1 }
 0x477   :  { %2001 = vsyncpa [#allocation6], 1 }
 0x478   :  { %2002 = vsyncpa [#allocation9], 1 }
 0x479   :  { %2003 = vsyncpa [#allocation4], 1 }

</bundles_post_ra>
